<compile_context>
chip_gen: v7x
topology: tpu7x:2x2x1
jax: 0.10.0
libtpu: 0.0.40
codegen_flags: <defaults>
</compile_context>

<pallas_src>
import jax
import jax.numpy as jnp
from jax.experimental import pallas as pl
from jax.experimental.pallas import tpu as pltpu


def lstm_kernel(x_ref, wih_ref, whh_ref, b_ref, out_ref, xproj_ref):
    T, B, D = x_ref.shape
    H = whh_ref.shape[0]

    # --- batched input projection (off the serial recurrence) -------------
    # bf16 operands (MXU-native), f32 accumulation, f32 bias add.
    x_all = x_ref[...].reshape(T * B, D).astype(jnp.bfloat16)      # (T*B, D)
    xproj_ref[...] = (
        jnp.dot(x_all, wih_ref[...], preferred_element_type=jnp.float32)
        + b_ref[...]
    ).reshape(T, B, 4 * H)                                          # (T, B, 4H)

    def sigmoid_prescaled(z):
        # i/f/o weight & bias columns were pre-scaled by 0.5 in prepare_params,
        # so sigmoid(x) == 0.5*tanh(0.5*x)+0.5 reduces to 0.5*tanh(z)+0.5:
        # one EUP op per gate, no per-step 0.5*z VPU multiply on the chain.
        return 0.5 * jnp.tanh(z) + 0.5

    def step(t, carry):
        h, c = carry
        gates = xproj_ref[t] + jnp.dot(
            h.astype(jnp.bfloat16), whh_ref[...],
            preferred_element_type=jnp.float32)                     # (B, 4H) f32
        # NOTE: lane-aligned gate slices assume H is a multiple of 128.
        i_g = sigmoid_prescaled(gates[:, 0 * H:1 * H])
        f_g = sigmoid_prescaled(gates[:, 1 * H:2 * H])
        g_g = jnp.tanh(gates[:, 2 * H:3 * H])
        o_g = sigmoid_prescaled(gates[:, 3 * H:4 * H])
        c_new = f_g * c + i_g * g_g
        h_new = o_g * jnp.tanh(c_new)
        return (h_new, c_new)

    # zero-initialized (h_0, c_0), as in LSTM.init_hidden
    h0 = jnp.zeros((B, H), jnp.float32)
    c0 = jnp.zeros((B, H), jnp.float32)
    # Full unroll only for short sequences; cap to 8 otherwise to bound vreg
    # pressure while keeping LLO scheduler visibility.
    unroll = T if T <= 32 else 8
    h_T, _ = jax.lax.fori_loop(0, T, step, (h0, c0), unroll=unroll)

    # forward() keeps only the last time step and applies ReLU
    out_ref[...] = jnp.maximum(h_T, 0.0).astype(out_ref.dtype)


def prepare_params(w_ih, w_hh, b_ih, b_hh):
    """One-time parameter setup (transpose, bias fold, sigmoid pre-scale fold,
    bf16 weight cast) — nothing of this sits on the per-call path."""
    H = w_hh.shape[1]
    wih_t = jnp.transpose(w_ih).astype(jnp.float32)           # (D, 4H)
    whh_t = jnp.transpose(w_hh).astype(jnp.float32)           # (H, 4H)
    bias = (b_ih + b_hh).reshape(1, -1).astype(jnp.float32)   # (1, 4H)

    # Fold the 0.5 pre-scale of the tanh-based sigmoid into the i/f/o gate
    # columns (PyTorch gate order [i, f, g, o]); leave the g columns unscaled.
    # 0.5 is a power of two -> no extra rounding on top of the bf16 cast.
    col_scale = jnp.concatenate([
        jnp.full((H,), 0.5, jnp.float32),   # i
        jnp.full((H,), 0.5, jnp.float32),   # f
        jnp.ones((H,), jnp.float32),        # g
        jnp.full((H,), 0.5, jnp.float32),   # o
    ]).reshape(1, -1)
    wih_t = wih_t * col_scale
    whh_t = whh_t * col_scale
    bias = bias * col_scale

    # bf16 weights: MXU-native on v6e/v7x, halves operand VMEM traffic.
    return wih_t.astype(jnp.bfloat16), whh_t.astype(jnp.bfloat16), bias


@jax.jit
def lstm_forward(x, wih_t, whh_t, bias):
    """x: (T, B, D) f32; wih_t: (D, 4H) bf16; whh_t: (H, 4H) bf16;
    bias: (1, 4H) f32. Returns relu(h_T): (B, H) f32."""
    T, B, D = x.shape
    H = whh_t.shape[0]

    # Static VMEM footprint estimate (everything resident at once).
    vmem_bytes = (x.size * 4 + wih_t.size * 2 + whh_t.size * 2
                  + bias.size * 4 + T * B * 4 * H * 4 + B * H * 4)
    compiler_params = None
    if vmem_bytes > (28 << 20):
        # TODO(synk): past ~48-56 MiB (v7x 64 MiB ceiling) switch to time-tiling
        # with an "arbitrary" grid axis carrying (h, c) in scratch instead of
        # just raising the limit.
        compiler_params = pltpu.CompilerParams(
            vmem_limit_bytes=min(int(vmem_bytes * 3 // 2), 100 << 20))

    return pl.pallas_call(
        lstm_kernel,
        out_shape=jax.ShapeDtypeStruct((B, H), jnp.float32),
        # No grid: single invocation, every loop-invariant operand DMA'd into
        # VMEM exactly once (no double-buffering, no per-step pipeline cost).
        in_specs=[
            pl.BlockSpec(memory_space=pltpu.MemorySpace.VMEM),   # x (T,B,D)
            pl.BlockSpec(memory_space=pltpu.MemorySpace.VMEM),   # W_ih^T bf16
            pl.BlockSpec(memory_space=pltpu.MemorySpace.VMEM),   # W_hh^T bf16
            pl.BlockSpec(memory_space=pltpu.MemorySpace.VMEM),   # bias f32
        ],
        out_specs=pl.BlockSpec(memory_space=pltpu.MemorySpace.VMEM),
        scratch_shapes=[
            pltpu.VMEM((T, B, 4 * H), jnp.float32),              # xproj
        ],
        compiler_params=compiler_params,
    )(x, wih_t, whh_t, bias)


def lstm_reference(x, w_ih, w_hh, b_ih, b_hh):
    """Pure-JAX reference matching torch.nn.LSTM gate order (i, f, g, o)."""
    T, B, D = x.shape
    H = w_hh.shape[1]
    h = jnp.zeros((B, H), jnp.float32)
    c = jnp.zeros((B, H), jnp.float32)

    def step(carry, x_t):
        h, c = carry
        gates = x_t @ w_ih.T + h @ w_hh.T + b_ih + b_hh
        i = jax.nn.sigmoid(gates[:, 0 * H:1 * H])
        f = jax.nn.sigmoid(gates[:, 1 * H:2 * H])
        g = jnp.tanh(gates[:, 2 * H:3 * H])
        o = jax.nn.sigmoid(gates[:, 3 * H:4 * H])
        c = f * c + i * g
        h = o * jnp.tanh(c)
        return (h, c), None

    (h, c), _ = jax.lax.scan(step, (h, c), x)
    return jnp.maximum(h, 0.0)


if __name__ == "__main__":
    # Small shapes consistent with the module: seq=8, batch=8,
    # input_feature=128, hidden_dim=128, n_layer=1.
    T, B, D, H = 8, 8, 128, 128
    key = jax.random.PRNGKey(0)
    kx, k1, k2, k3, k4 = jax.random.split(key, 5)

    # PyTorch nn.LSTM default init: U(-1/sqrt(H), 1/sqrt(H))
    bound = 1.0 / jnp.sqrt(jnp.float32(H))
    x = jax.random.normal(kx, (T, B, D), dtype=jnp.float32)
    w_ih = jax.random.uniform(k1, (4 * H, D), jnp.float32, -bound, bound)
    w_hh = jax.random.uniform(k2, (4 * H, H), jnp.float32, -bound, bound)
    b_ih = jax.random.uniform(k3, (4 * H,), jnp.float32, -bound, bound)
    b_hh = jax.random.uniform(k4, (4 * H,), jnp.float32, -bound, bound)

    wih_t, whh_t, bias = prepare_params(w_ih, w_hh, b_ih, b_hh)

    out = jax.block_until_ready(lstm_forward(x, wih_t, whh_t, bias))

    ref = lstm_reference(x, w_ih, w_hh, b_ih, b_hh)
    assert out.shape == (B, H)
    # bf16 matmul operands (vs f32-default reference dots) -> ~1e-2 tolerance;
    # gate values are bounded in [-1, 1] so this is tight in absolute terms.
    assert jnp.allclose(out, ref, atol=2e-2, rtol=2e-2), float(
        jnp.max(jnp.abs(out - ref)))

    print("KERNEL_OK")
</pallas_src>

<mosaic_0001>
module attributes {stable_mosaic.version = 11 : i64} {
  func.func @lstm_kernel(%arg0: memref<8x8x128xf32, #tpu.memory_space<vmem>>, %arg1: memref<128x512xbf16, #tpu.memory_space<vmem>>, %arg2: memref<128x512xbf16, #tpu.memory_space<vmem>>, %arg3: memref<1x512xf32, #tpu.memory_space<vmem>>, %arg4: memref<8x128xf32, #tpu.memory_space<vmem>>, %arg5: memref<8x8x512xf32, #tpu.memory_space<vmem>>) attributes {dimension_semantics = [], scalar_prefetch = 0 : i64, scratch_operands = 1 : i64, tpu.core_type = #tpu.core_type<tc>} {
    %c0 = arith.constant 0 : index
    %c0_0 = arith.constant 0 : index
    %c0_1 = arith.constant 0 : index
    %0 = vector.load %arg0[%c0, %c0_0, %c0_1] : memref<8x8x128xf32, #tpu.memory_space<vmem>>, vector<8x8x128xf32>
    %1 = vector.shape_cast %0 : vector<8x8x128xf32> to vector<64x128xf32>
    %2 = arith.truncf %1 : vector<64x128xf32> to vector<64x128xbf16>
    %c0_2 = arith.constant 0 : index
    %c0_3 = arith.constant 0 : index
    %3 = vector.load %arg1[%c0_2, %c0_3] : memref<128x512xbf16, #tpu.memory_space<vmem>>, vector<128x512xbf16>
    %cst = arith.constant dense<0.000000e+00> : vector<64x512xf32>
    %4 = tpu.matmul %2, %3, %cst {dimension_numbers = #tpu.dot_dimension_numbers<[1], [0], [0], [1], [0, 0, 1, 1], [], []>} : vector<64x128xbf16>, vector<128x512xbf16>, vector<64x512xf32> -> vector<64x512xf32>
    %c0_4 = arith.constant 0 : index
    %c0_5 = arith.constant 0 : index
    %5 = vector.load %arg3[%c0_4, %c0_5] : memref<1x512xf32, #tpu.memory_space<vmem>>, vector<1x512xf32>
    %6 = vector.broadcast %5 : vector<1x512xf32> to vector<64x512xf32>
    %7 = arith.addf %4, %6 : vector<64x512xf32>
    %8 = vector.shape_cast %7 : vector<64x512xf32> to vector<8x8x512xf32>
    %c0_6 = arith.constant 0 : index
    %c0_7 = arith.constant 0 : index
    %c0_8 = arith.constant 0 : index
    %9 = vector.load %arg5[%c0_6, %c0_7, %c0_8] : memref<8x8x512xf32, #tpu.memory_space<vmem>>, vector<8x8x512xf32>
    tpu.vector_store %arg5[%c0_6, %c0_7, %c0_8], %8 {strides = array<i32>} : memref<8x8x512xf32, #tpu.memory_space<vmem>>, vector<8x8x512xf32>,
    %cst_9 = arith.constant 0.000000e+00 : f32
    %10 = vector.broadcast %cst_9 : f32 to vector<8x128xf32>
    %cst_10 = arith.constant 0.000000e+00 : f32
    %11 = vector.broadcast %cst_10 : f32 to vector<8x128xf32>
    %c0_i32 = arith.constant 0 : i32
    %12 = arith.index_cast %c0_i32 : i32 to index
    %c0_11 = arith.constant 0 : index
    %c0_12 = arith.constant 0 : index
    %13 = vector.load %arg5[%12, %c0_11, %c0_12] : memref<8x8x512xf32, #tpu.memory_space<vmem>>, vector<1x8x512xf32>
    %14 = vector.shape_cast %13 : vector<1x8x512xf32> to vector<8x512xf32>
    %15 = arith.truncf %10 : vector<8x128xf32> to vector<8x128xbf16>
    %c0_13 = arith.constant 0 : index
    %c0_14 = arith.constant 0 : index
    %16 = vector.load %arg2[%c0_13, %c0_14] : memref<128x512xbf16, #tpu.memory_space<vmem>>, vector<128x512xbf16>
    %cst_15 = arith.constant dense<0.000000e+00> : vector<8x512xf32>
    %17 = tpu.matmul %15, %16, %cst_15 {dimension_numbers = #tpu.dot_dimension_numbers<[1], [0], [0], [1], [0, 0, 1, 1], [], []>} : vector<8x128xbf16>, vector<128x512xbf16>, vector<8x512xf32> -> vector<8x512xf32>
    %18 = arith.addf %14, %17 : vector<8x512xf32>
    %19 = vector.extract_strided_slice %18 {offsets = [0, 0], sizes = [8, 128], strides = [1, 1]} : vector<8x512xf32> to vector<8x128xf32>
    %20 = math.tanh %19 : vector<8x128xf32>
    %cst_16 = arith.constant 5.000000e-01 : f32
    %21 = vector.broadcast %cst_16 : f32 to vector<8x128xf32>
    %22 = arith.mulf %21, %20 : vector<8x128xf32>
    %cst_17 = arith.constant 5.000000e-01 : f32
    %23 = vector.broadcast %cst_17 : f32 to vector<8x128xf32>
    %24 = arith.addf %22, %23 : vector<8x128xf32>
    %25 = vector.extract_strided_slice %18 {offsets = [0, 128], sizes = [8, 128], strides = [1, 1]} : vector<8x512xf32> to vector<8x128xf32>
    %26 = math.tanh %25 : vector<8x128xf32>
    %cst_18 = arith.constant 5.000000e-01 : f32
    %27 = vector.broadcast %cst_18 : f32 to vector<8x128xf32>
    %28 = arith.mulf %27, %26 : vector<8x128xf32>
    %cst_19 = arith.constant 5.000000e-01 : f32
    %29 = vector.broadcast %cst_19 : f32 to vector<8x128xf32>
    %30 = arith.addf %28, %29 : vector<8x128xf32>
    %31 = vector.extract_strided_slice %18 {offsets = [0, 256], sizes = [8, 128], strides = [1, 1]} : vector<8x512xf32> to vector<8x128xf32>
    %32 = math.tanh %31 : vector<8x128xf32>
    %33 = vector.extract_strided_slice %18 {offsets = [0, 384], sizes = [8, 128], strides = [1, 1]} : vector<8x512xf32> to vector<8x128xf32>
    %34 = math.tanh %33 : vector<8x128xf32>
    %cst_20 = arith.constant 5.000000e-01 : f32
    %35 = vector.broadcast %cst_20 : f32 to vector<8x128xf32>
    %36 = arith.mulf %35, %34 : vector<8x128xf32>
    %cst_21 = arith.constant 5.000000e-01 : f32
    %37 = vector.broadcast %cst_21 : f32 to vector<8x128xf32>
    %38 = arith.addf %36, %37 : vector<8x128xf32>
    %39 = arith.mulf %30, %11 : vector<8x128xf32>
    %40 = arith.mulf %24, %32 : vector<8x128xf32>
    %41 = arith.addf %39, %40 : vector<8x128xf32>
    %42 = math.tanh %41 : vector<8x128xf32>
    %43 = arith.mulf %38, %42 : vector<8x128xf32>
    %c1_i32 = arith.constant 1 : i32
    %44 = arith.index_cast %c1_i32 : i32 to index
    %c0_22 = arith.constant 0 : index
    %c0_23 = arith.constant 0 : index
    %45 = vector.load %arg5[%44, %c0_22, %c0_23] : memref<8x8x512xf32, #tpu.memory_space<vmem>>, vector<1x8x512xf32>
    %46 = vector.shape_cast %45 : vector<1x8x512xf32> to vector<8x512xf32>
    %47 = arith.truncf %43 : vector<8x128xf32> to vector<8x128xbf16>
    %c0_24 = arith.constant 0 : index
    %c0_25 = arith.constant 0 : index
    %48 = vector.load %arg2[%c0_24, %c0_25] : memref<128x512xbf16, #tpu.memory_space<vmem>>, vector<128x512xbf16>
    %cst_26 = arith.constant dense<0.000000e+00> : vector<8x512xf32>
    %49 = tpu.matmul %47, %48, %cst_26 {dimension_numbers = #tpu.dot_dimension_numbers<[1], [0], [0], [1], [0, 0, 1, 1], [], []>} : vector<8x128xbf16>, vector<128x512xbf16>, vector<8x512xf32> -> vector<8x512xf32>
    %50 = arith.addf %46, %49 : vector<8x512xf32>
    %51 = vector.extract_strided_slice %50 {offsets = [0, 0], sizes = [8, 128], strides = [1, 1]} : vector<8x512xf32> to vector<8x128xf32>
    %52 = math.tanh %51 : vector<8x128xf32>
    %cst_27 = arith.constant 5.000000e-01 : f32
    %53 = vector.broadcast %cst_27 : f32 to vector<8x128xf32>
    %54 = arith.mulf %53, %52 : vector<8x128xf32>
    %cst_28 = arith.constant 5.000000e-01 : f32
    %55 = vector.broadcast %cst_28 : f32 to vector<8x128xf32>
    %56 = arith.addf %54, %55 : vector<8x128xf32>
    %57 = vector.extract_strided_slice %50 {offsets = [0, 128], sizes = [8, 128], strides = [1, 1]} : vector<8x512xf32> to vector<8x128xf32>
    %58 = math.tanh %57 : vector<8x128xf32>
    %cst_29 = arith.constant 5.000000e-01 : f32
    %59 = vector.broadcast %cst_29 : f32 to vector<8x128xf32>
    %60 = arith.mulf %59, %58 : vector<8x128xf32>
    %cst_30 = arith.constant 5.000000e-01 : f32
    %61 = vector.broadcast %cst_30 : f32 to vector<8x128xf32>
    %62 = arith.addf %60, %61 : vector<8x128xf32>
    %63 = vector.extract_strided_slice %50 {offsets = [0, 256], sizes = [8, 128], strides = [1, 1]} : vector<8x512xf32> to vector<8x128xf32>
    %64 = math.tanh %63 : vector<8x128xf32>
    %65 = vector.extract_strided_slice %50 {offsets = [0, 384], sizes = [8, 128], strides = [1, 1]} : vector<8x512xf32> to vector<8x128xf32>
    %66 = math.tanh %65 : vector<8x128xf32>
    %cst_31 = arith.constant 5.000000e-01 : f32
    %67 = vector.broadcast %cst_31 : f32 to vector<8x128xf32>
    %68 = arith.mulf %67, %66 : vector<8x128xf32>
    %cst_32 = arith.constant 5.000000e-01 : f32
    %69 = vector.broadcast %cst_32 : f32 to vector<8x128xf32>
    %70 = arith.addf %68, %69 : vector<8x128xf32>
    %71 = arith.mulf %62, %41 : vector<8x128xf32>
    %72 = arith.mulf %56, %64 : vector<8x128xf32>
    %73 = arith.addf %71, %72 : vector<8x128xf32>
    %74 = math.tanh %73 : vector<8x128xf32>
    %75 = arith.mulf %70, %74 : vector<8x128xf32>
    %c2_i32 = arith.constant 2 : i32
    %76 = arith.index_cast %c2_i32 : i32 to index
    %c0_33 = arith.constant 0 : index
    %c0_34 = arith.constant 0 : index
    %77 = vector.load %arg5[%76, %c0_33, %c0_34] : memref<8x8x512xf32, #tpu.memory_space<vmem>>, vector<1x8x512xf32>
    %78 = vector.shape_cast %77 : vector<1x8x512xf32> to vector<8x512xf32>
    %79 = arith.truncf %75 : vector<8x128xf32> to vector<8x128xbf16>
    %c0_35 = arith.constant 0 : index
    %c0_36 = arith.constant 0 : index
    %80 = vector.load %arg2[%c0_35, %c0_36] : memref<128x512xbf16, #tpu.memory_space<vmem>>, vector<128x512xbf16>
    %cst_37 = arith.constant dense<0.000000e+00> : vector<8x512xf32>
    %81 = tpu.matmul %79, %80, %cst_37 {dimension_numbers = #tpu.dot_dimension_numbers<[1], [0], [0], [1], [0, 0, 1, 1], [], []>} : vector<8x128xbf16>, vector<128x512xbf16>, vector<8x512xf32> -> vector<8x512xf32>
    %82 = arith.addf %78, %81 : vector<8x512xf32>
    %83 = vector.extract_strided_slice %82 {offsets = [0, 0], sizes = [8, 128], strides = [1, 1]} : vector<8x512xf32> to vector<8x128xf32>
    %84 = math.tanh %83 : vector<8x128xf32>
    %cst_38 = arith.constant 5.000000e-01 : f32
    %85 = vector.broadcast %cst_38 : f32 to vector<8x128xf32>
    %86 = arith.mulf %85, %84 : vector<8x128xf32>
    %cst_39 = arith.constant 5.000000e-01 : f32
    %87 = vector.broadcast %cst_39 : f32 to vector<8x128xf32>
    %88 = arith.addf %86, %87 : vector<8x128xf32>
    %89 = vector.extract_strided_slice %82 {offsets = [0, 128], sizes = [8, 128], strides = [1, 1]} : vector<8x512xf32> to vector<8x128xf32>
    %90 = math.tanh %89 : vector<8x128xf32>
    %cst_40 = arith.constant 5.000000e-01 : f32
    %91 = vector.broadcast %cst_40 : f32 to vector<8x128xf32>
    %92 = arith.mulf %91, %90 : vector<8x128xf32>
    %cst_41 = arith.constant 5.000000e-01 : f32
    %93 = vector.broadcast %cst_41 : f32 to vector<8x128xf32>
    %94 = arith.addf %92, %93 : vector<8x128xf32>
    %95 = vector.extract_strided_slice %82 {offsets = [0, 256], sizes = [8, 128], strides = [1, 1]} : vector<8x512xf32> to vector<8x128xf32>
    %96 = math.tanh %95 : vector<8x128xf32>
    %97 = vector.extract_strided_slice %82 {offsets = [0, 384], sizes = [8, 128], strides = [1, 1]} : vector<8x512xf32> to vector<8x128xf32>
    %98 = math.tanh %97 : vector<8x128xf32>
    %cst_42 = arith.constant 5.000000e-01 : f32
    %99 = vector.broadcast %cst_42 : f32 to vector<8x128xf32>
    %100 = arith.mulf %99, %98 : vector<8x128xf32>
    %cst_43 = arith.constant 5.000000e-01 : f32
    %101 = vector.broadcast %cst_43 : f32 to vector<8x128xf32>
    %102 = arith.addf %100, %101 : vector<8x128xf32>
    %103 = arith.mulf %94, %73 : vector<8x128xf32>
    %104 = arith.mulf %88, %96 : vector<8x128xf32>
    %105 = arith.addf %103, %104 : vector<8x128xf32>
    %106 = math.tanh %105 : vector<8x128xf32>
    %107 = arith.mulf %102, %106 : vector<8x128xf32>
    %c3_i32 = arith.constant 3 : i32
    %108 = arith.index_cast %c3_i32 : i32 to index
    %c0_44 = arith.constant 0 : index
    %c0_45 = arith.constant 0 : index
    %109 = vector.load %arg5[%108, %c0_44, %c0_45] : memref<8x8x512xf32, #tpu.memory_space<vmem>>, vector<1x8x512xf32>
    %110 = vector.shape_cast %109 : vector<1x8x512xf32> to vector<8x512xf32>
    %111 = arith.truncf %107 : vector<8x128xf32> to vector<8x128xbf16>
    %c0_46 = arith.constant 0 : index
    %c0_47 = arith.constant 0 : index
    %112 = vector.load %arg2[%c0_46, %c0_47] : memref<128x512xbf16, #tpu.memory_space<vmem>>, vector<128x512xbf16>
    %cst_48 = arith.constant dense<0.000000e+00> : vector<8x512xf32>
    %113 = tpu.matmul %111, %112, %cst_48 {dimension_numbers = #tpu.dot_dimension_numbers<[1], [0], [0], [1], [0, 0, 1, 1], [], []>} : vector<8x128xbf16>, vector<128x512xbf16>, vector<8x512xf32> -> vector<8x512xf32>
    %114 = arith.addf %110, %113 : vector<8x512xf32>
    %115 = vector.extract_strided_slice %114 {offsets = [0, 0], sizes = [8, 128], strides = [1, 1]} : vector<8x512xf32> to vector<8x128xf32>
    %116 = math.tanh %115 : vector<8x128xf32>
    %cst_49 = arith.constant 5.000000e-01 : f32
    %117 = vector.broadcast %cst_49 : f32 to vector<8x128xf32>
    %118 = arith.mulf %117, %116 : vector<8x128xf32>
    %cst_50 = arith.constant 5.000000e-01 : f32
    %119 = vector.broadcast %cst_50 : f32 to vector<8x128xf32>
    %120 = arith.addf %118, %119 : vector<8x128xf32>
    %121 = vector.extract_strided_slice %114 {offsets = [0, 128], sizes = [8, 128], strides = [1, 1]} : vector<8x512xf32> to vector<8x128xf32>
    %122 = math.tanh %121 : vector<8x128xf32>
    %cst_51 = arith.constant 5.000000e-01 : f32
    %123 = vector.broadcast %cst_51 : f32 to vector<8x128xf32>
    %124 = arith.mulf %123, %122 : vector<8x128xf32>
    %cst_52 = arith.constant 5.000000e-01 : f32
    %125 = vector.broadcast %cst_52 : f32 to vector<8x128xf32>
    %126 = arith.addf %124, %125 : vector<8x128xf32>
    %127 = vector.extract_strided_slice %114 {offsets = [0, 256], sizes = [8, 128], strides = [1, 1]} : vector<8x512xf32> to vector<8x128xf32>
    %128 = math.tanh %127 : vector<8x128xf32>
    %129 = vector.extract_strided_slice %114 {offsets = [0, 384], sizes = [8, 128], strides = [1, 1]} : vector<8x512xf32> to vector<8x128xf32>
    %130 = math.tanh %129 : vector<8x128xf32>
    %cst_53 = arith.constant 5.000000e-01 : f32
    %131 = vector.broadcast %cst_53 : f32 to vector<8x128xf32>
    %132 = arith.mulf %131, %130 : vector<8x128xf32>
    %cst_54 = arith.constant 5.000000e-01 : f32
    %133 = vector.broadcast %cst_54 : f32 to vector<8x128xf32>
    %134 = arith.addf %132, %133 : vector<8x128xf32>
    %135 = arith.mulf %126, %105 : vector<8x128xf32>
    %136 = arith.mulf %120, %128 : vector<8x128xf32>
    %137 = arith.addf %135, %136 : vector<8x128xf32>
    %138 = math.tanh %137 : vector<8x128xf32>
    %139 = arith.mulf %134, %138 : vector<8x128xf32>
    %c4_i32 = arith.constant 4 : i32
    %140 = arith.index_cast %c4_i32 : i32 to index
    %c0_55 = arith.constant 0 : index
    %c0_56 = arith.constant 0 : index
    %141 = vector.load %arg5[%140, %c0_55, %c0_56] : memref<8x8x512xf32, #tpu.memory_space<vmem>>, vector<1x8x512xf32>
    %142 = vector.shape_cast %141 : vector<1x8x512xf32> to vector<8x512xf32>
    %143 = arith.truncf %139 : vector<8x128xf32> to vector<8x128xbf16>
    %c0_57 = arith.constant 0 : index
    %c0_58 = arith.constant 0 : index
    %144 = vector.load %arg2[%c0_57, %c0_58] : memref<128x512xbf16, #tpu.memory_space<vmem>>, vector<128x512xbf16>
    %cst_59 = arith.constant dense<0.000000e+00> : vector<8x512xf32>
    %145 = tpu.matmul %143, %144, %cst_59 {dimension_numbers = #tpu.dot_dimension_numbers<[1], [0], [0], [1], [0, 0, 1, 1], [], []>} : vector<8x128xbf16>, vector<128x512xbf16>, vector<8x512xf32> -> vector<8x512xf32>
    %146 = arith.addf %142, %145 : vector<8x512xf32>
    %147 = vector.extract_strided_slice %146 {offsets = [0, 0], sizes = [8, 128], strides = [1, 1]} : vector<8x512xf32> to vector<8x128xf32>
    %148 = math.tanh %147 : vector<8x128xf32>
    %cst_60 = arith.constant 5.000000e-01 : f32
    %149 = vector.broadcast %cst_60 : f32 to vector<8x128xf32>
    %150 = arith.mulf %149, %148 : vector<8x128xf32>
    %cst_61 = arith.constant 5.000000e-01 : f32
    %151 = vector.broadcast %cst_61 : f32 to vector<8x128xf32>
    %152 = arith.addf %150, %151 : vector<8x128xf32>
    %153 = vector.extract_strided_slice %146 {offsets = [0, 128], sizes = [8, 128], strides = [1, 1]} : vector<8x512xf32> to vector<8x128xf32>
    %154 = math.tanh %153 : vector<8x128xf32>
    %cst_62 = arith.constant 5.000000e-01 : f32
    %155 = vector.broadcast %cst_62 : f32 to vector<8x128xf32>
    %156 = arith.mulf %155, %154 : vector<8x128xf32>
    %cst_63 = arith.constant 5.000000e-01 : f32
    %157 = vector.broadcast %cst_63 : f32 to vector<8x128xf32>
    %158 = arith.addf %156, %157 : vector<8x128xf32>
    %159 = vector.extract_strided_slice %146 {offsets = [0, 256], sizes = [8, 128], strides = [1, 1]} : vector<8x512xf32> to vector<8x128xf32>
    %160 = math.tanh %159 : vector<8x128xf32>
    %161 = vector.extract_strided_slice %146 {offsets = [0, 384], sizes = [8, 128], strides = [1, 1]} : vector<8x512xf32> to vector<8x128xf32>
    %162 = math.tanh %161 : vector<8x128xf32>
    %cst_64 = arith.constant 5.000000e-01 : f32
    %163 = vector.broadcast %cst_64 : f32 to vector<8x128xf32>
    %164 = arith.mulf %163, %162 : vector<8x128xf32>
    %cst_65 = arith.constant 5.000000e-01 : f32
    %165 = vector.broadcast %cst_65 : f32 to vector<8x128xf32>
    %166 = arith.addf %164, %165 : vector<8x128xf32>
    %167 = arith.mulf %158, %137 : vector<8x128xf32>
    %168 = arith.mulf %152, %160 : vector<8x128xf32>
    %169 = arith.addf %167, %168 : vector<8x128xf32>
    %170 = math.tanh %169 : vector<8x128xf32>
    %171 = arith.mulf %166, %170 : vector<8x128xf32>
    %c5_i32 = arith.constant 5 : i32
    %172 = arith.index_cast %c5_i32 : i32 to index
    %c0_66 = arith.constant 0 : index
    %c0_67 = arith.constant 0 : index
    %173 = vector.load %arg5[%172, %c0_66, %c0_67] : memref<8x8x512xf32, #tpu.memory_space<vmem>>, vector<1x8x512xf32>
    %174 = vector.shape_cast %173 : vector<1x8x512xf32> to vector<8x512xf32>
    %175 = arith.truncf %171 : vector<8x128xf32> to vector<8x128xbf16>
    %c0_68 = arith.constant 0 : index
    %c0_69 = arith.constant 0 : index
    %176 = vector.load %arg2[%c0_68, %c0_69] : memref<128x512xbf16, #tpu.memory_space<vmem>>, vector<128x512xbf16>
    %cst_70 = arith.constant dense<0.000000e+00> : vector<8x512xf32>
    %177 = tpu.matmul %175, %176, %cst_70 {dimension_numbers = #tpu.dot_dimension_numbers<[1], [0], [0], [1], [0, 0, 1, 1], [], []>} : vector<8x128xbf16>, vector<128x512xbf16>, vector<8x512xf32> -> vector<8x512xf32>
    %178 = arith.addf %174, %177 : vector<8x512xf32>
    %179 = vector.extract_strided_slice %178 {offsets = [0, 0], sizes = [8, 128], strides = [1, 1]} : vector<8x512xf32> to vector<8x128xf32>
    %180 = math.tanh %179 : vector<8x128xf32>
    %cst_71 = arith.constant 5.000000e-01 : f32
    %181 = vector.broadcast %cst_71 : f32 to vector<8x128xf32>
    %182 = arith.mulf %181, %180 : vector<8x128xf32>
    %cst_72 = arith.constant 5.000000e-01 : f32
    %183 = vector.broadcast %cst_72 : f32 to vector<8x128xf32>
    %184 = arith.addf %182, %183 : vector<8x128xf32>
    %185 = vector.extract_strided_slice %178 {offsets = [0, 128], sizes = [8, 128], strides = [1, 1]} : vector<8x512xf32> to vector<8x128xf32>
    %186 = math.tanh %185 : vector<8x128xf32>
    %cst_73 = arith.constant 5.000000e-01 : f32
    %187 = vector.broadcast %cst_73 : f32 to vector<8x128xf32>
    %188 = arith.mulf %187, %186 : vector<8x128xf32>
    %cst_74 = arith.constant 5.000000e-01 : f32
    %189 = vector.broadcast %cst_74 : f32 to vector<8x128xf32>
    %190 = arith.addf %188, %189 : vector<8x128xf32>
    %191 = vector.extract_strided_slice %178 {offsets = [0, 256], sizes = [8, 128], strides = [1, 1]} : vector<8x512xf32> to vector<8x128xf32>
    %192 = math.tanh %191 : vector<8x128xf32>
    %193 = vector.extract_strided_slice %178 {offsets = [0, 384], sizes = [8, 128], strides = [1, 1]} : vector<8x512xf32> to vector<8x128xf32>
    %194 = math.tanh %193 : vector<8x128xf32>
    %cst_75 = arith.constant 5.000000e-01 : f32
    %195 = vector.broadcast %cst_75 : f32 to vector<8x128xf32>
    %196 = arith.mulf %195, %194 : vector<8x128xf32>
    %cst_76 = arith.constant 5.000000e-01 : f32
    %197 = vector.broadcast %cst_76 : f32 to vector<8x128xf32>
    %198 = arith.addf %196, %197 : vector<8x128xf32>
    %199 = arith.mulf %190, %169 : vector<8x128xf32>
    %200 = arith.mulf %184, %192 : vector<8x128xf32>
    %201 = arith.addf %199, %200 : vector<8x128xf32>
    %202 = math.tanh %201 : vector<8x128xf32>
    %203 = arith.mulf %198, %202 : vector<8x128xf32>
    %c6_i32 = arith.constant 6 : i32
    %204 = arith.index_cast %c6_i32 : i32 to index
    %c0_77 = arith.constant 0 : index
    %c0_78 = arith.constant 0 : index
    %205 = vector.load %arg5[%204, %c0_77, %c0_78] : memref<8x8x512xf32, #tpu.memory_space<vmem>>, vector<1x8x512xf32>
    %206 = vector.shape_cast %205 : vector<1x8x512xf32> to vector<8x512xf32>
    %207 = arith.truncf %203 : vector<8x128xf32> to vector<8x128xbf16>
    %c0_79 = arith.constant 0 : index
    %c0_80 = arith.constant 0 : index
    %208 = vector.load %arg2[%c0_79, %c0_80] : memref<128x512xbf16, #tpu.memory_space<vmem>>, vector<128x512xbf16>
    %cst_81 = arith.constant dense<0.000000e+00> : vector<8x512xf32>
    %209 = tpu.matmul %207, %208, %cst_81 {dimension_numbers = #tpu.dot_dimension_numbers<[1], [0], [0], [1], [0, 0, 1, 1], [], []>} : vector<8x128xbf16>, vector<128x512xbf16>, vector<8x512xf32> -> vector<8x512xf32>
    %210 = arith.addf %206, %209 : vector<8x512xf32>
    %211 = vector.extract_strided_slice %210 {offsets = [0, 0], sizes = [8, 128], strides = [1, 1]} : vector<8x512xf32> to vector<8x128xf32>
    %212 = math.tanh %211 : vector<8x128xf32>
    %cst_82 = arith.constant 5.000000e-01 : f32
    %213 = vector.broadcast %cst_82 : f32 to vector<8x128xf32>
    %214 = arith.mulf %213, %212 : vector<8x128xf32>
    %cst_83 = arith.constant 5.000000e-01 : f32
    %215 = vector.broadcast %cst_83 : f32 to vector<8x128xf32>
    %216 = arith.addf %214, %215 : vector<8x128xf32>
    %217 = vector.extract_strided_slice %210 {offsets = [0, 128], sizes = [8, 128], strides = [1, 1]} : vector<8x512xf32> to vector<8x128xf32>
    %218 = math.tanh %217 : vector<8x128xf32>
    %cst_84 = arith.constant 5.000000e-01 : f32
    %219 = vector.broadcast %cst_84 : f32 to vector<8x128xf32>
    %220 = arith.mulf %219, %218 : vector<8x128xf32>
    %cst_85 = arith.constant 5.000000e-01 : f32
    %221 = vector.broadcast %cst_85 : f32 to vector<8x128xf32>
    %222 = arith.addf %220, %221 : vector<8x128xf32>
    %223 = vector.extract_strided_slice %210 {offsets = [0, 256], sizes = [8, 128], strides = [1, 1]} : vector<8x512xf32> to vector<8x128xf32>
    %224 = math.tanh %223 : vector<8x128xf32>
    %225 = vector.extract_strided_slice %210 {offsets = [0, 384], sizes = [8, 128], strides = [1, 1]} : vector<8x512xf32> to vector<8x128xf32>
    %226 = math.tanh %225 : vector<8x128xf32>
    %cst_86 = arith.constant 5.000000e-01 : f32
    %227 = vector.broadcast %cst_86 : f32 to vector<8x128xf32>
    %228 = arith.mulf %227, %226 : vector<8x128xf32>
    %cst_87 = arith.constant 5.000000e-01 : f32
    %229 = vector.broadcast %cst_87 : f32 to vector<8x128xf32>
    %230 = arith.addf %228, %229 : vector<8x128xf32>
    %231 = arith.mulf %222, %201 : vector<8x128xf32>
    %232 = arith.mulf %216, %224 : vector<8x128xf32>
    %233 = arith.addf %231, %232 : vector<8x128xf32>
    %234 = math.tanh %233 : vector<8x128xf32>
    %235 = arith.mulf %230, %234 : vector<8x128xf32>
    %c7_i32 = arith.constant 7 : i32
    %236 = arith.index_cast %c7_i32 : i32 to index
    %c0_88 = arith.constant 0 : index
    %c0_89 = arith.constant 0 : index
    %237 = vector.load %arg5[%236, %c0_88, %c0_89] : memref<8x8x512xf32, #tpu.memory_space<vmem>>, vector<1x8x512xf32>
    %238 = vector.shape_cast %237 : vector<1x8x512xf32> to vector<8x512xf32>
    %239 = arith.truncf %235 : vector<8x128xf32> to vector<8x128xbf16>
    %c0_90 = arith.constant 0 : index
    %c0_91 = arith.constant 0 : index
    %240 = vector.load %arg2[%c0_90, %c0_91] : memref<128x512xbf16, #tpu.memory_space<vmem>>, vector<128x512xbf16>
    %cst_92 = arith.constant dense<0.000000e+00> : vector<8x512xf32>
    %241 = tpu.matmul %239, %240, %cst_92 {dimension_numbers = #tpu.dot_dimension_numbers<[1], [0], [0], [1], [0, 0, 1, 1], [], []>} : vector<8x128xbf16>, vector<128x512xbf16>, vector<8x512xf32> -> vector<8x512xf32>
    %242 = arith.addf %238, %241 : vector<8x512xf32>
    %243 = vector.extract_strided_slice %242 {offsets = [0, 0], sizes = [8, 128], strides = [1, 1]} : vector<8x512xf32> to vector<8x128xf32>
    %244 = math.tanh %243 : vector<8x128xf32>
    %cst_93 = arith.constant 5.000000e-01 : f32
    %245 = vector.broadcast %cst_93 : f32 to vector<8x128xf32>
    %246 = arith.mulf %245, %244 : vector<8x128xf32>
    %cst_94 = arith.constant 5.000000e-01 : f32
    %247 = vector.broadcast %cst_94 : f32 to vector<8x128xf32>
    %248 = arith.addf %246, %247 : vector<8x128xf32>
    %249 = vector.extract_strided_slice %242 {offsets = [0, 128], sizes = [8, 128], strides = [1, 1]} : vector<8x512xf32> to vector<8x128xf32>
    %250 = math.tanh %249 : vector<8x128xf32>
    %cst_95 = arith.constant 5.000000e-01 : f32
    %251 = vector.broadcast %cst_95 : f32 to vector<8x128xf32>
    %252 = arith.mulf %251, %250 : vector<8x128xf32>
    %cst_96 = arith.constant 5.000000e-01 : f32
    %253 = vector.broadcast %cst_96 : f32 to vector<8x128xf32>
    %254 = arith.addf %252, %253 : vector<8x128xf32>
    %255 = vector.extract_strided_slice %242 {offsets = [0, 256], sizes = [8, 128], strides = [1, 1]} : vector<8x512xf32> to vector<8x128xf32>
    %256 = math.tanh %255 : vector<8x128xf32>
    %257 = vector.extract_strided_slice %242 {offsets = [0, 384], sizes = [8, 128], strides = [1, 1]} : vector<8x512xf32> to vector<8x128xf32>
    %258 = math.tanh %257 : vector<8x128xf32>
    %cst_97 = arith.constant 5.000000e-01 : f32
    %259 = vector.broadcast %cst_97 : f32 to vector<8x128xf32>
    %260 = arith.mulf %259, %258 : vector<8x128xf32>
    %cst_98 = arith.constant 5.000000e-01 : f32
    %261 = vector.broadcast %cst_98 : f32 to vector<8x128xf32>
    %262 = arith.addf %260, %261 : vector<8x128xf32>
    %263 = arith.mulf %254, %233 : vector<8x128xf32>
    %264 = arith.mulf %248, %256 : vector<8x128xf32>
    %265 = arith.addf %263, %264 : vector<8x128xf32>
    %266 = math.tanh %265 : vector<8x128xf32>
    %267 = arith.mulf %262, %266 : vector<8x128xf32>
    %c8_i32 = arith.constant 8 : i32
    %cst_99 = arith.constant 0.000000e+00 : f32
    %268 = vector.broadcast %cst_99 : f32 to vector<8x128xf32>
    %269 = arith.maximumf %267, %268 : vector<8x128xf32>
    %c0_100 = arith.constant 0 : index
    %c0_101 = arith.constant 0 : index
    %270 = vector.load %arg4[%c0_100, %c0_101] : memref<8x128xf32, #tpu.memory_space<vmem>>, vector<8x128xf32>
    tpu.vector_store %arg4[%c0_100, %c0_101], %269 {strides = array<i32>} : memref<8x128xf32, #tpu.memory_space<vmem>>, vector<8x128xf32>,
    return
  }
}

</mosaic_0001>

<bundles_post_ra>
// kernel: lstm_forward.1
= control target key start
LH: loop header
LB: loop body
LE: loop exit
PB: predicated region body
PF: predicated region fallthrough
CT: control target
= control target key end

     0   :  { %9 = vsyncpa [#allocation4], 0  ;;  %s2466_s0 = inlined_call_operand.hbm [shape: f32[8,8,128], index: 0, kind: input, shape index: {}]   ;;  %s2467_s1 = inlined_call_operand.hbm [shape: bf16[128,512], index: 1, kind: input, shape index: {}]   ;;  %s2468_s2 = inlined_call_operand.hbm [shape: bf16[128,512], index: 2, kind: input, shape index: {}]   ;;  %s2469_s3 = inlined_call_operand.vmem [shape: f32[1,512], index: 3, kind: input, shape index: {}]   ;;  %s2470_s4 = inlined_call_operand.hbm [shape: f32[8,128], index: 4, kind: output, shape index: {}]  }
   0x1   :  { %10 = vsyncpa [#allocation7], 0 }
   0x2   :  { %11 = vsyncpa [#allocation5], 0  ;;  %s1903_s15 = smov [#allocation6]   ;;  %s1809_s19 = scalar_lea.hbm %s2467_s1, 4096 }
   0x3   :  { %s29_s16 = sshll.u32 %s1903_s15, 4  ;;  %p1810_p0 = scmp.ne.s32.totalorder %s2467_s1, %s1809_s19  ;;  %s30_s16 = int_to_ptr.vmem [resolvable:$true] %s29_s16 }
   0x4   :  { %p1813_p1 = scmp.lt.u32.totalorder %s1809_s19, %s2467_s1 }
   0x6   :  { %p1815_p2 = pnand %p1813_p1, %p1810_p0 }
   0x8   :  { %1818 = shalt.err (!%p1815_p2)
}
   0x9   :  { %s1819_s24 = scalar_lea.vmem %s30_s16, 4096  ;;  %p1824_p4 = scmp.lt.s32.totalorder %s30_s16, %s30_s16 }
   0xa   :  { %p1820_p3 = scmp.ne.s32.totalorder %s30_s16, %s1819_s24  ;;  %p1825_p5 = scmp.lt.s32.totalorder %s1819_s24, %s1819_s24 }
   0xc   :  { %p1826_p6 = por %p1825_p5, %p1824_p4 }
   0xe   :  { %p1827_p7 = pnand %p1826_p6, %p1820_p3 }
  0x10   :  { %1830 = shalt.err (!%p1827_p7)
}
  0x11   :  { %s1904_s25 = smov 256   ;;  %s1905_s26 = smov 16  }
  0x12   :  { %35 = dma.hbm_to_vmem [thread:$0]  %s2467_s1, 4096, %s30_s16, [#allocation7], %s1904_s25, %s1904_s25, %s1905_s26  }
  0x13   :  { %s1906_s29 = smov [#allocation3]   ;;  %s1831_s7 = scalar_lea.hbm %s2466_s0, 1024 }
  0x14   :  { %s17_s30 = sshll.u32 %s1906_s29, 4  ;;  %p1832_p8 = scmp.ne.s32.totalorder %s2466_s0, %s1831_s7  ;;  %s18_s30 = int_to_ptr.vmem [resolvable:$true] %s17_s30 }
  0x15   :  { %p1835_p9 = scmp.lt.u32.totalorder %s1831_s7, %s2466_s0 }
  0x17   :  { %p1837_p10 = pnand %p1835_p9, %p1832_p8 }
  0x19   :  { %1840 = shalt.err (!%p1837_p10)
}
  0x1a   :  { %s1841_s12 = scalar_lea.vmem %s18_s30, 1024  ;;  %p1846_p12 = scmp.lt.s32.totalorder %s18_s30, %s18_s30 }
  0x1b   :  { %p1842_p11 = scmp.ne.s32.totalorder %s18_s30, %s1841_s12  ;;  %p1847_p13 = scmp.lt.s32.totalorder %s1841_s12, %s1841_s12 }
  0x1d   :  { %p1848_p0 = por %p1847_p13, %p1846_p12 }
  0x1f   :  { %p1849_p1 = pnand %p1848_p0, %p1842_p11 }
  0x21   :  { %1852 = shalt.err (!%p1849_p1)
}
  0x22   :  { %s1907_s1 = smov 128   ;;  %s1908_s13 = smov 8  }
  0x23   :  { %23 = dma.hbm_to_vmem [thread:$0]  %s2466_s0, 1024, %s18_s30, [#allocation4], %s1907_s1, %s1907_s1, %s1908_s13  }
  0x24   :  { %s1909_s16 = smov [#allocation8]   ;;  %s1853_s20 = scalar_lea.hbm %s2468_s2, 4096 }
  0x25   :  { %s41_s17 = sshll.u32 %s1909_s16, 4  ;;  %p1854_p2 = scmp.ne.s32.totalorder %s2468_s2, %s1853_s20  ;;  %s42_s17 = int_to_ptr.vmem [resolvable:$true] %s41_s17 }
  0x26   :  { %p1857_p3 = scmp.lt.u32.totalorder %s1853_s20, %s2468_s2 }
  0x28   :  { %p1859_p4 = pnand %p1857_p3, %p1854_p2 }
  0x2a   :  { %1862 = shalt.err (!%p1859_p4)
}
  0x2b   :  { %s1863_s27 = scalar_lea.vmem %s42_s17, 4096  ;;  %p1868_p6 = scmp.lt.s32.totalorder %s42_s17, %s42_s17 }
  0x2c   :  { %p1864_p5 = scmp.ne.s32.totalorder %s42_s17, %s1863_s27  ;;  %p1869_p7 = scmp.lt.s32.totalorder %s1863_s27, %s1863_s27 }
  0x2e   :  { %p1870_p8 = por %p1869_p7, %p1868_p6 }
  0x30   :  { %p1871_p9 = pnand %p1870_p8, %p1864_p5 }
  0x32   :  { %1874 = shalt.err (!%p1871_p9)
}
  0x33   :  { %47 = dma.hbm_to_vmem [thread:$0]  %s2468_s2, 4096, %s42_s17, [#allocation7], %s1904_s25, %s1904_s25, %s1905_s26  }
  0x34   :  { %1897 = dma.done.wait [#allocation4], 1024  }
  0x35   :  { %1898 = vsyncadd [#allocation4], 4294966272 }
  0x36   :  { %1899 = dma.done.wait [#allocation7], 8192  }
  0x37   :  { %1900 = vsyncadd [#allocation7], 4294959104  ;;  %v2471_v0 = vmov 0   ;;  %v1601_v1 = vld [vmem:[#allocation6 + $0x4] ss:$16 sps:$4 sm:$0xff]   ;;  %v61_v34 = vld [vmem:[#allocation3 + $0x8] sm:$0xff] }
  0x38   :  { %318 = vmatprep.mubr.bf16.mxu0 %v2471_v0  ;;  %391 = vmatprep.mubr.bf16.mxu1 %v2471_v0  ;;  %v1603_v2 = vld [vmem:[#allocation6 + $0xc] ss:$16 sps:$4 sm:$0xff]   ;;  %v1605_v3 = vld [vmem:[#allocation6] ss:$16 sps:$4 sm:$0xff]   ;;  %v1606_v4 = vld [vmem:[#allocation6 + $0x8] ss:$16 sps:$4 sm:$0xff]  }
  0x39   :  { %286 = vmatprep.subr.bf16.mxu0 %v1601_v1  ;;  %359 = vmatprep.subr.bf16.mxu1 %v1603_v2  ;;  %v1607_v5 = vld [vmem:[#allocation6 + $0x24] ss:$16 sps:$4 sm:$0xff]   ;;  %v1609_v6 = vld [vmem:[#allocation6 + $0x2c] ss:$16 sps:$4 sm:$0xff]   ;;  %v1611_v7 = vld [vmem:[#allocation6 + $0x20] ss:$16 sps:$4 sm:$0xff]  }
  0x3a   :  { %287 = vmatpush1.bf16.msra.mxu0 %v1605_v3  ;;  %360 = vmatpush1.bf16.msra.mxu1 %v1606_v4  ;;  %v1612_v8 = vld [vmem:[#allocation6 + $0x28] ss:$16 sps:$4 sm:$0xff]   ;;  %v1613_v9 = vld [vmem:[#allocation6 + $0x44] ss:$16 sps:$4 sm:$0xff]   ;;  %v1615_v10 = vld [vmem:[#allocation6 + $0x4c] ss:$16 sps:$4 sm:$0xff]  }
  0x3b   :  { %288 = vmatprep.subr.bf16.mxu0 %v1607_v5  ;;  %361 = vmatprep.subr.bf16.mxu1 %v1609_v6  ;;  %v1617_v11 = vld [vmem:[#allocation6 + $0x40] ss:$16 sps:$4 sm:$0xff]   ;;  %v1618_v12 = vld [vmem:[#allocation6 + $0x48] ss:$16 sps:$4 sm:$0xff]   ;;  %v1619_v13 = vld [vmem:[#allocation6 + $0x64] ss:$16 sps:$4 sm:$0xff]  }
  0x3c   :  { %v1621_v14 = vld [vmem:[#allocation6 + $0x6c] ss:$16 sps:$4 sm:$0xff]   ;;  %v1623_v15 = vld [vmem:[#allocation6 + $0x60] ss:$16 sps:$4 sm:$0xff]   ;;  %v1624_v16 = vld [vmem:[#allocation6 + $0x68] ss:$16 sps:$4 sm:$0xff]  }
  0x3d   :  { %v1625_v17 = vld [vmem:[#allocation6 + $0x84] ss:$16 sps:$4 sm:$0xff]   ;;  %v1627_v18 = vld [vmem:[#allocation6 + $0x8c] ss:$16 sps:$4 sm:$0xff]   ;;  %v1629_v19 = vld [vmem:[#allocation6 + $0x80] ss:$16 sps:$4 sm:$0xff]  }
  0x3e   :  { %289 = vmatpush1.bf16.msra.mxu0 %v1611_v7  ;;  %362 = vmatpush1.bf16.msra.mxu1 %v1612_v8  ;;  %v1630_v20 = vld [vmem:[#allocation6 + $0x88] ss:$16 sps:$4 sm:$0xff]   ;;  %v1631_v21 = vld [vmem:[#allocation6 + $0xa4] ss:$16 sps:$4 sm:$0xff]   ;;  %v1633_v22 = vld [vmem:[#allocation6 + $0xac] ss:$16 sps:$4 sm:$0xff]  }
  0x3f   :  { %290 = vmatprep.subr.bf16.mxu0 %v1613_v9  ;;  %363 = vmatprep.subr.bf16.mxu1 %v1615_v10  ;;  %v1635_v23 = vld [vmem:[#allocation6 + $0xa0] ss:$16 sps:$4 sm:$0xff]   ;;  %v1636_v24 = vld [vmem:[#allocation6 + $0xa8] ss:$16 sps:$4 sm:$0xff]   ;;  %v1637_v25 = vld [vmem:[#allocation6 + $0xc4] ss:$16 sps:$4 sm:$0xff]  }
  0x40   :  { %v1639_v26 = vld [vmem:[#allocation6 + $0xcc] ss:$16 sps:$4 sm:$0xff]   ;;  %v1641_v27 = vld [vmem:[#allocation6 + $0xc0] ss:$16 sps:$4 sm:$0xff]   ;;  %v1642_v28 = vld [vmem:[#allocation6 + $0xc8] ss:$16 sps:$4 sm:$0xff]  }
  0x41   :  { %v1643_v29 = vld [vmem:[#allocation6 + $0xe4] ss:$16 sps:$4 sm:$0xff]   ;;  %v1645_v30 = vld [vmem:[#allocation6 + $0xec] ss:$16 sps:$4 sm:$0xff]   ;;  %v1647_v31 = vld [vmem:[#allocation6 + $0xe0] ss:$16 sps:$4 sm:$0xff]  }
  0x42   :  { %291 = vmatpush1.bf16.msra.mxu0 %v1617_v11  ;;  %364 = vmatpush1.bf16.msra.mxu1 %v1618_v12  ;;  %v1648_v32 = vld [vmem:[#allocation6 + $0xe8] ss:$16 sps:$4 sm:$0xff]   ;;  %v60_v33 = vld [vmem:[#allocation3] sm:$0xff]  ;;  %v1983_v36 = vld [vmem:[#allocation8 + $0xc] ss:$16 sps:$4 sm:$0xff]  }
  0x43   :  { %292 = vmatprep.subr.bf16.mxu0 %v1619_v13  ;;  %365 = vmatprep.subr.bf16.mxu1 %v1621_v14  ;;  %v1981_v35 = vld [vmem:[#allocation8 + $0x4] ss:$16 sps:$4 sm:$0xff]   ;;  %v68_v37 = vpack.c.bf16 %v61_v34, %v60_v33  ;;  %v1985_v38 = vld [vmem:[#allocation8] ss:$16 sps:$4 sm:$0xff]   ;;  %v1987_v39 = vld [vmem:[#allocation8 + $0x8] ss:$16 sps:$4 sm:$0xff]   ;;  %v106_v14 = vlaneseq }
  0x44   :  { %v1991_v40 = vld [vmem:[#allocation8 + $0x24] ss:$16 sps:$4 sm:$0xff]   ;;  %v1993_v41 = vld [vmem:[#allocation8 + $0x2c] ss:$16 sps:$4 sm:$0xff]   ;;  %v1995_v42 = vld [vmem:[#allocation8 + $0x20] ss:$16 sps:$4 sm:$0xff]  }
  0x45   :  { %v1997_v43 = vld [vmem:[#allocation8 + $0x28] ss:$16 sps:$4 sm:$0xff]   ;;  %v62_v44 = vld [vmem:[#allocation3 + $0x10] sm:$0xff]  ;;  %v2005_v47 = vld [vmem:[#allocation8 + $0x4c] ss:$16 sps:$4 sm:$0xff]  }
  0x46   :  { %293 = vmatpush1.bf16.msra.mxu0 %v1623_v15  ;;  %366 = vmatpush1.bf16.msra.mxu1 %v1624_v16  ;;  %v63_v45 = vld [vmem:[#allocation3 + $0x18] sm:$0xff]  ;;  %v2001_v46 = vld [vmem:[#allocation8 + $0x44] ss:$16 sps:$4 sm:$0xff]   ;;  %v2009_v49 = vld [vmem:[#allocation8 + $0x40] ss:$16 sps:$4 sm:$0xff]   ;;  %v107_v15 = vshrl.u32 %v106_v14, 7 }
  0x47   :  { %294 = vmatprep.subr.bf16.mxu0 %v1625_v17  ;;  %367 = vmatprep.subr.bf16.mxu1 %v1627_v18  ;;  %v69_v48 = vpack.c.bf16 %v63_v45, %v62_v44  ;;  %v2011_v50 = vld [vmem:[#allocation8 + $0x48] ss:$16 sps:$4 sm:$0xff]   ;;  %v2015_v51 = vld [vmem:[#allocation8 + $0x64] ss:$16 sps:$4 sm:$0xff]   ;;  %v2019_v52 = vld [vmem:[#allocation8 + $0x6c] ss:$16 sps:$4 sm:$0xff]  }
  0x48   :  { %v2021_v53 = vld [vmem:[#allocation8 + $0x60] ss:$16 sps:$4 sm:$0xff]   ;;  %v2023_v54 = vld [vmem:[#allocation8 + $0x68] ss:$16 sps:$4 sm:$0xff]   ;;  %v2029_v57 = vld [vmem:[#allocation8 + $0x84] ss:$16 sps:$4 sm:$0xff]  }
  0x49   :  { %v64_v55 = vld [vmem:[#allocation3 + $0x20] sm:$0xff]  ;;  %v65_v56 = vld [vmem:[#allocation3 + $0x28] sm:$0xff]  ;;  %v66_v3 = vld [vmem:[#allocation3 + $0x30] sm:$0xff]  ;;  %v116_v16 = vsub.s32 2, %v107_v15  ;;  %v120_v17 = vsub.s32 3, %v107_v15  ;;  %v108_v18 = vsub.s32 0, %v107_v15 }
  0x4a   :  { %295 = vmatpush1.bf16.msra.mxu0 %v1629_v19  ;;  %368 = vmatpush1.bf16.msra.mxu1 %v1630_v20  ;;  %v2031_v58 = vld [vmem:[#allocation8 + $0x8c] ss:$16 sps:$4 sm:$0xff]   ;;  %v70_v59 = vpack.c.bf16 %v65_v56, %v64_v55  ;;  %v2037_v60 = vld [vmem:[#allocation8 + $0x80] ss:$16 sps:$4 sm:$0xff]   ;;  %v2039_v61 = vld [vmem:[#allocation8 + $0x88] ss:$16 sps:$4 sm:$0xff]  }
  0x4b   :  { %296 = vmatprep.subr.bf16.mxu0 %v1631_v21  ;;  %369 = vmatprep.subr.bf16.mxu1 %v1633_v22  ;;  %v2043_v62 = vld [vmem:[#allocation8 + $0xa4] ss:$16 sps:$4 sm:$0xff]   ;;  %v2045_v63 = vld [vmem:[#allocation8 + $0xac] ss:$16 sps:$4 sm:$0xff]   ;;  %v2047_v1 = vld [vmem:[#allocation8 + $0xa0] ss:$16 sps:$4 sm:$0xff]  }
  0x4c   :  { %v2051_v2 = vld [vmem:[#allocation8 + $0xa8] ss:$16 sps:$4 sm:$0xff]   ;;  %v2055_v5 = vld [vmem:[#allocation8 + $0xc4] ss:$16 sps:$4 sm:$0xff]   ;;  %v2057_v6 = vld [vmem:[#allocation8 + $0xcc] ss:$16 sps:$4 sm:$0xff]  }
  0x4d   :  { %v67_v4 = vld [vmem:[#allocation3 + $0x38] sm:$0xff]  ;;  %v2063_v8 = vld [vmem:[#allocation8 + $0xc0] ss:$16 sps:$4 sm:$0xff]   ;;  %v2069_v10 = vld [vmem:[#allocation8 + $0xe4] ss:$16 sps:$4 sm:$0xff]   ;;  %v112_v20 = vsub.s32 1, %v107_v15 }
  0x4e   :  { %297 = vmatpush1.bf16.msra.mxu0 %v1635_v23  ;;  %370 = vmatpush1.bf16.msra.mxu1 %v1636_v24  ;;  %v71_v7 = vpack.c.bf16 %v67_v4, %v66_v3  ;;  %v2065_v9 = vld [vmem:[#allocation8 + $0xc8] ss:$16 sps:$4 sm:$0xff]   ;;  %v2071_v11 = vld [vmem:[#allocation8 + $0xec] ss:$16 sps:$4 sm:$0xff]   ;;  %v2075_v12 = vld [vmem:[#allocation8 + $0xe0] ss:$16 sps:$4 sm:$0xff]  }
  0x4f   :  { %298 = vmatprep.subr.bf16.mxu0 %v1637_v25  ;;  %371 = vmatprep.subr.bf16.mxu1 %v1639_v26  ;;  %v2077_v13 = vld [vmem:[#allocation8 + $0xe8] ss:$16 sps:$4 sm:$0xff]   ;;  %v104_v19 = vld [vmem:[%s2469_s3] sm:$0xf]  ;;  %s1911_s3 = smov [#allocation9]  }
  0x50   :  { %v2126_v21 = vrot.slane %v104_v19, %v116_v16  ;;  %v2132_v24 = vrot.slane %v104_v19, %v120_v17  ;;  %v109_v25 = vrot.slane %v104_v19, %v108_v18  ;;  %s1518_s26 = sshll.u32 %s1911_s3, 4  ;;  %s1519_s26 = int_to_ptr.vmem [resolvable:$true] %s1518_s26 }
  0x51   :  { %s1875_s29 = scalar_lea.vmem %s1519_s26, 128  ;;  %p1880_p11 = scmp.lt.s32.totalorder %s1519_s26, %s1519_s26 }
  0x52   :  { %299 = vmatpush1.bf16.msra.mxu0 %v1641_v27  ;;  %372 = vmatpush1.bf16.msra.mxu1 %v1642_v28  ;;  %v113_v28 = vrot.slane %v104_v19, %v112_v20  ;;  %p1876_p10 = scmp.ne.s32.totalorder %s1519_s26, %s1875_s29  ;;  %p1881_p12 = scmp.lt.s32.totalorder %s1875_s29, %s1875_s29 }
  0x53   :  { %300 = vmatprep.subr.bf16.mxu0 %v1643_v29  ;;  %373 = vmatprep.subr.bf16.mxu1 %v1645_v30 }
  0x54   :  { %p1882_p13 = por %p1881_p12, %p1880_p11 }
  0x56   :  { %301 = vmatpush1.bf16.msra.mxu0 %v1647_v31  ;;  %374 = vmatpush1.bf16.msra.mxu1 %v1648_v32  ;;  %p1883_p0 = pnand %p1882_p13, %p1876_p10 }
  0x57   :  { %660 = vmatprep.subr.bf16.mxu0 %v1981_v35  ;;  %701 = vmatprep.subr.bf16.mxu1 %v1983_v36 }
  0x59   :  { %319 = vmatmul.mubr.bf16.vlgmr.msra.gmra.mrb[0].mxu0 %v68_v37  ;;  %392 = vmatmul.mubr.bf16.vlgmr.msra.gmra.mrb[0].mxu1 %v68_v37 }
  0x5a   :  { %661 = vmatpush1.bf16.msra.mxu0 %v1985_v38  ;;  %702 = vmatpush1.bf16.msra.mxu1 %v1987_v39 }
  0x5b   :  { %662 = vmatprep.subr.bf16.mxu0 %v1991_v40  ;;  %703 = vmatprep.subr.bf16.mxu1 %v1993_v41 }
  0x5c   :  { %328 = vmatprep.mubr.bf16.mxu0 %v2471_v0  ;;  %401 = vmatprep.mubr.bf16.mxu1 %v2471_v0 }
  0x5e   :  { %663 = vmatpush1.bf16.msra.mxu0 %v1995_v42  ;;  %704 = vmatpush1.bf16.msra.mxu1 %v1997_v43 }
  0x5f   :  { %664 = vmatprep.subr.bf16.mxu0 %v2001_v46  ;;  %705 = vmatprep.subr.bf16.mxu1 %v2005_v47 }
  0x61   :  { %329 = vmatmul.mubr.bf16.gmra.mrb[4].mxu0 %v69_v48  ;;  %402 = vmatmul.mubr.bf16.gmra.mrb[4].mxu1 %v69_v48 }
  0x62   :  { %665 = vmatpush1.bf16.msra.mxu0 %v2009_v49  ;;  %706 = vmatpush1.bf16.msra.mxu1 %v2011_v50 }
  0x63   :  { %666 = vmatprep.subr.bf16.mxu0 %v2015_v51  ;;  %707 = vmatprep.subr.bf16.mxu1 %v2019_v52 }
  0x64   :  { %338 = vmatprep.mubr.bf16.mxu0 %v2471_v0  ;;  %411 = vmatprep.mubr.bf16.mxu1 %v2471_v0 }
  0x66   :  { %667 = vmatpush1.bf16.msra.mxu0 %v2021_v53  ;;  %708 = vmatpush1.bf16.msra.mxu1 %v2023_v54 }
  0x67   :  { %668 = vmatprep.subr.bf16.mxu0 %v2029_v57  ;;  %709 = vmatprep.subr.bf16.mxu1 %v2031_v58 }
  0x69   :  { %339 = vmatmul.mubr.bf16.gmra.mrb[8].mxu0 %v70_v59  ;;  %412 = vmatmul.mubr.bf16.gmra.mrb[8].mxu1 %v70_v59 }
  0x6a   :  { %669 = vmatpush1.bf16.msra.mxu0 %v2037_v60  ;;  %710 = vmatpush1.bf16.msra.mxu1 %v2039_v61 }
  0x6b   :  { %670 = vmatprep.subr.bf16.mxu0 %v2043_v62  ;;  %711 = vmatprep.subr.bf16.mxu1 %v2045_v63 }
  0x6c   :  { %348 = vmatprep.mubr.bf16.mxu0 %v2471_v0  ;;  %421 = vmatprep.mubr.bf16.mxu1 %v2471_v0 }
  0x6e   :  { %671 = vmatpush1.bf16.msra.mxu0 %v2047_v1  ;;  %712 = vmatpush1.bf16.msra.mxu1 %v2051_v2 }
  0x6f   :  { %672 = vmatprep.subr.bf16.mxu0 %v2055_v5  ;;  %713 = vmatprep.subr.bf16.mxu1 %v2057_v6 }
  0x71   :  { %349 = vmatmul.mubr.bf16.gmra.mrb[12].mxu0 %v71_v7  ;;  %422 = vmatmul.mubr.bf16.gmra.mrb[12].mxu1 %v71_v7 }
  0x72   :  { %673 = vmatpush1.bf16.msra.mxu0 %v2063_v8  ;;  %714 = vmatpush1.bf16.msra.mxu1 %v2065_v9 }
  0x73   :  { %674 = vmatprep.subr.bf16.mxu0 %v2069_v10  ;;  %715 = vmatprep.subr.bf16.mxu1 %v2071_v11 }
  0x74   :  { %692 = vmatprep.mubr.bf16.mxu0 %v2471_v0  ;;  %733 = vmatprep.mubr.bf16.mxu1 %v2471_v0 }
  0x76   :  { %675 = vmatpush1.bf16.msra.mxu0 %v2075_v12  ;;  %716 = vmatpush1.bf16.msra.mxu1 %v2077_v13 }
  0x77   :  { %767 = vmatprep.subr.bf16.mxu0 %v1981_v35  ;;  %808 = vmatprep.subr.bf16.mxu1 %v1983_v36 }
  0x79   :  { %693 = vmatmul.mubr.bf16.vlgmr.msra.gmra.mrb[16].mxu0 %v2471_v0  ;;  %734 = vmatmul.mubr.bf16.vlgmr.msra.gmra.mrb[16].mxu1 %v2471_v0 }
  0x7a   :  { %768 = vmatpush1.bf16.msra.mxu0 %v1985_v38  ;;  %809 = vmatpush1.bf16.msra.mxu1 %v1987_v39 }
  0x7b   :  { %769 = vmatprep.subr.bf16.mxu0 %v1991_v40  ;;  %810 = vmatprep.subr.bf16.mxu1 %v1993_v41 }
  0x7c   :  { %799 = vmatprep.mubr.bf16.mxu0 %v2471_v0  ;;  %840 = vmatprep.mubr.bf16.mxu1 %v2471_v0 }
  0x7e   :  { %770 = vmatpush1.bf16.msra.mxu0 %v1995_v42  ;;  %811 = vmatpush1.bf16.msra.mxu1 %v1997_v43 }
  0x7f   :  { %771 = vmatprep.subr.bf16.mxu0 %v2001_v46  ;;  %812 = vmatprep.subr.bf16.mxu1 %v2005_v47 }
  0x82   :  { %772 = vmatpush1.bf16.msra.mxu0 %v2009_v49  ;;  %813 = vmatpush1.bf16.msra.mxu1 %v2011_v50 }
  0x83   :  { %773 = vmatprep.subr.bf16.mxu0 %v2015_v51  ;;  %814 = vmatprep.subr.bf16.mxu1 %v2019_v52 }
  0x86   :  { %774 = vmatpush1.bf16.msra.mxu0 %v2021_v53  ;;  %815 = vmatpush1.bf16.msra.mxu1 %v2023_v54 }
  0x87   :  { %775 = vmatprep.subr.bf16.mxu0 %v2029_v57  ;;  %816 = vmatprep.subr.bf16.mxu1 %v2031_v58 }
  0x8a   :  { %776 = vmatpush1.bf16.msra.mxu0 %v2037_v60  ;;  %817 = vmatpush1.bf16.msra.mxu1 %v2039_v61 }
  0x8b   :  { %777 = vmatprep.subr.bf16.mxu0 %v2043_v62  ;;  %818 = vmatprep.subr.bf16.mxu1 %v2045_v63 }
  0x8e   :  { %778 = vmatpush1.bf16.msra.mxu0 %v2047_v1  ;;  %819 = vmatpush1.bf16.msra.mxu1 %v2051_v2 }
  0x8f   :  { %779 = vmatprep.subr.bf16.mxu0 %v2055_v5  ;;  %820 = vmatprep.subr.bf16.mxu1 %v2057_v6 }
  0x92   :  { %780 = vmatpush1.bf16.msra.mxu0 %v2063_v8  ;;  %821 = vmatpush1.bf16.msra.mxu1 %v2065_v9 }
  0x93   :  { %781 = vmatprep.subr.bf16.mxu0 %v2069_v10  ;;  %822 = vmatprep.subr.bf16.mxu1 %v2071_v11 }
  0x96   :  { %782 = vmatpush1.bf16.msra.mxu0 %v2075_v12  ;;  %823 = vmatpush1.bf16.msra.mxu1 %v2077_v13 }
  0x97   :  { %874 = vmatprep.subr.bf16.mxu0 %v1981_v35  ;;  %915 = vmatprep.subr.bf16.mxu1 %v1983_v36 }
 0x12c   :  { %v2128_v22 = vpop.f32.mrb[0].mxu0  ;;  %v2130_v23 = vpop.f32.mrb[0].mxu1 }
 0x12d   :  { %v322_v26 = vpop.f32.mrb[1].mxu0  ;;  %v395_v27 = vpop.f32.mrb[1].mxu1 }
 0x12e   :  { %v324_v29 = vpop.f32.mrb[2].mxu0  ;;  %v397_v30 = vpop.f32.mrb[2].mxu1 }
 0x12f   :  { %v2134_v31 = vadd.f32 %v324_v29, %v109_v25  ;;  %v326_v32 = vpop.f32.mrb[3].mxu0  ;;  %v2137_v33 = vadd.f32 %v397_v30, %v2126_v21  ;;  %v399_v34 = vpop.f32.mrb[3].mxu1 }
 0x130   :  { %v2139_v37 = vadd.f32 %v326_v32, %v113_v28  ;;  %v2142_v44 = vadd.f32 %v399_v34, %v2132_v24 }
 0x134   :  { %v330_v45 = vpop.f32.mrb[4].mxu0  ;;  %v403_v48 = vpop.f32.mrb[4].mxu1 }
 0x135   :  { %v2144_v55 = vadd.f32 %v330_v45, %v109_v25  ;;  %v332_v56 = vpop.f32.mrb[5].mxu0  ;;  %v2147_v59 = vadd.f32 %v403_v48, %v2126_v21  ;;  %v405_v3 = vpop.f32.mrb[5].mxu1 }
 0x136   :  { %v2149_v4 = vadd.f32 %v332_v56, %v113_v28  ;;  %v334_v7 = vpop.f32.mrb[6].mxu0  ;;  %v2152_v14 = vadd.f32 %v405_v3, %v2132_v24  ;;  %v407_v15 = vpop.f32.mrb[6].mxu1 }
 0x137   :  { %v2154_v16 = vadd.f32 %v334_v7, %v109_v25  ;;  %v336_v17 = vpop.f32.mrb[7].mxu0  ;;  %v2157_v18 = vadd.f32 %v407_v15, %v2126_v21  ;;  %v409_v19 = vpop.f32.mrb[7].mxu1 }
 0x138   :  { %v2159_v20 = vadd.f32 %v336_v17, %v113_v28  ;;  %v2162_v29 = vadd.f32 %v409_v19, %v2132_v24 }
 0x139   :  { %2473 = vst [vmem:[#allocation13_spill] sm:$0xff] %v2154_v16  ;;  %2474 = vst [vmem:[#allocation14_spill] sm:$0xff] %v2157_v18 }
 0x13a   :  { %2475 = vst [vmem:[#allocation15_spill] sm:$0xff] %v2159_v20  ;;  %2476 = vst [vmem:[#allocation16_spill] sm:$0xff] %v2162_v29 }
 0x13c   :  { %v340_v30 = vpop.f32.mrb[8].mxu0  ;;  %v413_v32 = vpop.f32.mrb[8].mxu1 }
 0x13d   :  { %v2164_v34 = vadd.f32 %v340_v30, %v109_v25  ;;  %v342_v45 = vpop.f32.mrb[9].mxu0  ;;  %v2167_v48 = vadd.f32 %v413_v32, %v2126_v21  ;;  %v415_v56 = vpop.f32.mrb[9].mxu1 }
 0x13e   :  { %v2169_v3 = vadd.f32 %v342_v45, %v113_v28  ;;  %v344_v7 = vpop.f32.mrb[10].mxu0  ;;  %v2172_v15 = vadd.f32 %v415_v56, %v2132_v24  ;;  %v417_v17 = vpop.f32.mrb[10].mxu1 }
 0x13f   :  { %2477 = vst [vmem:[#allocation17_spill] sm:$0xff] %v2164_v34  ;;  %2478 = vst [vmem:[#allocation18_spill] sm:$0xff] %v2167_v48  ;;  %v2174_v0 = vadd.f32 %v344_v7, %v109_v25  ;;  %v346_v19 = vpop.f32.mrb[11].mxu0  ;;  %v2177_v29 = vadd.f32 %v417_v17, %v2126_v21  ;;  %v419_v30 = vpop.f32.mrb[11].mxu1 }
 0x140   :  { %2479 = vst [vmem:[#allocation19_spill] sm:$0xff] %v2169_v3  ;;  %2480 = vst [vmem:[#allocation20_spill] sm:$0xff] %v2172_v15  ;;  %v2179_v34 = vadd.f32 %v346_v19, %v113_v28  ;;  %v2182_v32 = vadd.f32 %v419_v30, %v2132_v24 }
 0x141   :  { %2481 = vst [vmem:[#allocation21_spill] sm:$0xff] %v2174_v0  ;;  %2482 = vst [vmem:[#allocation22_spill] sm:$0xff] %v2177_v29 }
 0x142   :  { %2483 = vst [vmem:[#allocation23_spill] sm:$0xff] %v2179_v34  ;;  %2484 = vst [vmem:[#allocation24_spill] sm:$0xff] %v2182_v32 }
 0x144   :  { %v350_v48 = vpop.f32.mrb[12].mxu0  ;;  %v423_v45 = vpop.f32.mrb[12].mxu1 }
 0x145   :  { %v2184_v3 = vadd.f32 %v350_v48, %v109_v25  ;;  %v352_v20 = vpop.f32.mrb[13].mxu0  ;;  %v2187_v56 = vadd.f32 %v423_v45, %v2126_v21  ;;  %v425_v7 = vpop.f32.mrb[13].mxu1 }
 0x146   :  { %v2189_v0 = vadd.f32 %v352_v20, %v113_v28  ;;  %v354_v15 = vpop.f32.mrb[14].mxu0  ;;  %v2192_v17 = vadd.f32 %v425_v7, %v2132_v24  ;;  %v427_v19 = vpop.f32.mrb[14].mxu1  ;;  %v321_v20 = vadd.f32 %v2128_v22, %v109_v25  ;;  %v323_v7 = vadd.f32 %v322_v26, %v113_v28 }
 0x147   :  { %2485 = vst [vmem:[#allocation25_spill] sm:$0xff] %v2184_v3  ;;  %2486 = vst [vmem:[#allocation26_spill] sm:$0xff] %v2187_v56  ;;  %v2194_v34 = vadd.f32 %v354_v15, %v109_v25  ;;  %v356_v30 = vpop.f32.mrb[15].mxu0  ;;  %v2197_v32 = vadd.f32 %v427_v19, %v2126_v21  ;;  %v429_v48 = vpop.f32.mrb[15].mxu1 }
 0x148   :  { %2487 = vst [vmem:[#allocation27_spill] sm:$0xff] %v2189_v0  ;;  %2488 = vst [vmem:[#allocation28_spill] sm:$0xff] %v2192_v17  ;;  %v2199_v3 = vadd.f32 %v356_v30, %v113_v28  ;;  %v2202_v45 = vadd.f32 %v429_v48, %v2132_v24  ;;  %v394_v0 = vadd.f32 %v2130_v23, %v2126_v21 }
 0x149   :  { %2489 = vst [vmem:[#allocation29_spill] sm:$0xff] %v2194_v34  ;;  %2490 = vst [vmem:[#allocation30_spill] sm:$0xff] %v2197_v32  ;;  %v396_v17 = vadd.f32 %v395_v27, %v2132_v24 }
 0x14a   :  { %2491 = vst [vmem:[#allocation31_spill] sm:$0xff] %v2199_v3  ;;  %2492 = vst [vmem:[#allocation32_spill] sm:$0xff] %v2202_v45 }
 0x14c   :  { %v694_v15 = vpop.f32.mrb[16].mxu0  ;;  %v735_v34 = vpop.f32.mrb[16].mxu1 }
 0x14d   :  { %v742_v56 = vadd.f32 %v694_v15, %v321_v20  ;;  %v744_v29 = vadd.f32 %v735_v34, %v394_v0  ;;  %v696_v19 = vpop.f32.mrb[17].mxu0  ;;  %v737_v32 = vpop.f32.mrb[17].mxu1 }
 0x14e   :  { %v743_v18 = vadd.f32 %v696_v19, %v323_v7  ;;  %v745_v30 = vadd.f32 %v737_v32, %v396_v17  ;;  %v698_v3 = vpop.f32.mrb[18].mxu0  ;;  %v739_v16 = vpop.f32.mrb[18].mxu1  ;;  %v2493_v17 = vmov 0  }
 0x14f   :  { %1697 = vtanh.f32 %v742_v56  ;;  %v699_v48 = vpop.f32.mrb[19].mxu0  ;;  %v740_v45 = vpop.f32.mrb[19].mxu1 }
 0x150   :  { %1699 = vtanh.f32 %v743_v18 }
 0x151   :  { %1701 = vtanh.f32 %v744_v29 }
 0x152   :  { %1703 = vtanh.f32 %v745_v30 }
 0x159   :  { %v1698_v22 = vpop.eup %1697 }
 0x15a   :  { %v747_v21 = vmul.f32 0.5, %v1698_v22  ;;  %v1700_v23 = vpop.eup %1699 }
 0x15b   :  { %v750_v24 = vmul.f32 0.5, %v1700_v23  ;;  %v1702_v26 = vpop.eup %1701 }
 0x15c   :  { %v748_v25 = vadd.f32 0.5, %v747_v21  ;;  %v1704_v16 = vpop.eup %1703 }
 0x15d   :  { %v751_v27 = vadd.f32 0.5, %v750_v24  ;;  %v754_v3 = vmul.f32 0.5, %v1704_v16 }
 0x15e   :  { %v757_v0 = vmul.f32 %v1702_v26, %v748_v25 }
 0x15f   :  { %v756_v28 = vmul.f32 0.0, %v751_v27  ;;  %v755_v32 = vadd.f32 0.5, %v754_v3 }
 0x161   :  { %v2208_v34 = vadd.f32 %v757_v0, %v756_v28 }
 0x163   :  { %1705 = vtanh.f32 %v2208_v34 }
 0x16d   :  { %v1706_v56 = vpop.eup %1705 }
 0x16e   :  { %v760_v18 = vmul.f32 %v1706_v56, %v755_v32 }
 0x170   :  { %v766_v29 = vpack.c.bf16 %v760_v18, %v760_v18 }
 0x172   :  { %800 = vmatmul.mubr.bf16.vlgmr.msra.gmra.mrb[20].mxu0 %v766_v29  ;;  %841 = vmatmul.mubr.bf16.vlgmr.msra.gmra.mrb[20].mxu1 %v766_v29 }
 0x173   :  { %875 = vmatpush1.bf16.msra.mxu0 %v1985_v38  ;;  %916 = vmatpush1.bf16.msra.mxu1 %v1987_v39 }
 0x174   :  { %876 = vmatprep.subr.bf16.mxu0 %v1991_v40  ;;  %917 = vmatprep.subr.bf16.mxu1 %v1993_v41 }
 0x175   :  { %906 = vmatprep.mubr.bf16.mxu0 %v2493_v17  ;;  %947 = vmatprep.mubr.bf16.mxu1 %v2493_v17 }
 0x177   :  { %877 = vmatpush1.bf16.msra.mxu0 %v1995_v42  ;;  %918 = vmatpush1.bf16.msra.mxu1 %v1997_v43 }
 0x178   :  { %878 = vmatprep.subr.bf16.mxu0 %v2001_v46  ;;  %919 = vmatprep.subr.bf16.mxu1 %v2005_v47 }
 0x17b   :  { %879 = vmatpush1.bf16.msra.mxu0 %v2009_v49  ;;  %920 = vmatpush1.bf16.msra.mxu1 %v2011_v50 }
 0x17c   :  { %880 = vmatprep.subr.bf16.mxu0 %v2015_v51  ;;  %921 = vmatprep.subr.bf16.mxu1 %v2019_v52 }
 0x17f   :  { %881 = vmatpush1.bf16.msra.mxu0 %v2021_v53  ;;  %922 = vmatpush1.bf16.msra.mxu1 %v2023_v54 }
 0x180   :  { %882 = vmatprep.subr.bf16.mxu0 %v2029_v57  ;;  %923 = vmatprep.subr.bf16.mxu1 %v2031_v58 }
 0x183   :  { %883 = vmatpush1.bf16.msra.mxu0 %v2037_v60  ;;  %924 = vmatpush1.bf16.msra.mxu1 %v2039_v61 }
 0x184   :  { %884 = vmatprep.subr.bf16.mxu0 %v2043_v62  ;;  %925 = vmatprep.subr.bf16.mxu1 %v2045_v63 }
 0x187   :  { %885 = vmatpush1.bf16.msra.mxu0 %v2047_v1  ;;  %926 = vmatpush1.bf16.msra.mxu1 %v2051_v2 }
 0x188   :  { %886 = vmatprep.subr.bf16.mxu0 %v2055_v5  ;;  %927 = vmatprep.subr.bf16.mxu1 %v2057_v6 }
 0x18b   :  { %887 = vmatpush1.bf16.msra.mxu0 %v2063_v8  ;;  %928 = vmatpush1.bf16.msra.mxu1 %v2065_v9 }
 0x18c   :  { %888 = vmatprep.subr.bf16.mxu0 %v2069_v10  ;;  %929 = vmatprep.subr.bf16.mxu1 %v2071_v11 }
 0x18f   :  { %889 = vmatpush1.bf16.msra.mxu0 %v2075_v12  ;;  %930 = vmatpush1.bf16.msra.mxu1 %v2077_v13 }
 0x190   :  { %981 = vmatprep.subr.bf16.mxu0 %v1981_v35  ;;  %1022 = vmatprep.subr.bf16.mxu1 %v1983_v36 }
 0x245   :  { %v801_v45 = vpop.f32.mrb[20].mxu0  ;;  %v842_v20 = vpop.f32.mrb[20].mxu1 }
 0x246   :  { %v849_v7 = vadd.f32 %v801_v45, %v2134_v31  ;;  %v851_v15 = vadd.f32 %v842_v20, %v2137_v33  ;;  %v803_v19 = vpop.f32.mrb[21].mxu0  ;;  %v844_v30 = vpop.f32.mrb[21].mxu1 }
 0x247   :  { %v850_v48 = vadd.f32 %v803_v19, %v2139_v37  ;;  %v852_v22 = vadd.f32 %v844_v30, %v2142_v44  ;;  %v805_v21 = vpop.f32.mrb[22].mxu0  ;;  %v846_v23 = vpop.f32.mrb[22].mxu1 }
 0x248   :  { %1707 = vtanh.f32 %v849_v7  ;;  %v806_v25 = vpop.f32.mrb[23].mxu0  ;;  %v847_v24 = vpop.f32.mrb[23].mxu1 }
 0x249   :  { %1709 = vtanh.f32 %v850_v48 }
 0x24a   :  { %1711 = vtanh.f32 %v851_v15 }
 0x24b   :  { %1713 = vtanh.f32 %v852_v22 }
 0x252   :  { %v1708_v26 = vpop.eup %1707 }
 0x253   :  { %v854_v27 = vmul.f32 0.5, %v1708_v26  ;;  %v1710_v0 = vpop.eup %1709 }
 0x254   :  { %v857_v31 = vmul.f32 0.5, %v1710_v0  ;;  %v1712_v33 = vpop.eup %1711 }
 0x255   :  { %v855_v28 = vadd.f32 0.5, %v854_v27  ;;  %v1714_v44 = vpop.eup %1713 }
 0x256   :  { %v858_v16 = vadd.f32 0.5, %v857_v31  ;;  %v861_v56 = vmul.f32 0.5, %v1714_v44 }
 0x257   :  { %v864_v3 = vmul.f32 %v1712_v33, %v855_v28 }
 0x258   :  { %v863_v37 = vmul.f32 %v858_v16, %v2208_v34  ;;  %v862_v18 = vadd.f32 0.5, %v861_v56 }
 0x25a   :  { %v2250_v32 = vadd.f32 %v864_v3, %v863_v37 }
 0x25c   :  { %1715 = vtanh.f32 %v2250_v32 }
 0x266   :  { %v1716_v29 = vpop.eup %1715 }
 0x267   :  { %v867_v45 = vmul.f32 %v1716_v29, %v862_v18 }
 0x269   :  { %v873_v20 = vpack.c.bf16 %v867_v45, %v867_v45 }
 0x26b   :  { %907 = vmatmul.mubr.bf16.vlgmr.msra.gmra.mrb[24].mxu0 %v873_v20  ;;  %948 = vmatmul.mubr.bf16.vlgmr.msra.gmra.mrb[24].mxu1 %v873_v20  ;;  %v2494_v20 = vld [vmem:[#allocation13_spill] sm:$0xff] }
 0x26c   :  { %982 = vmatpush1.bf16.msra.mxu0 %v1985_v38  ;;  %1023 = vmatpush1.bf16.msra.mxu1 %v1987_v39 }
 0x26d   :  { %983 = vmatprep.subr.bf16.mxu0 %v1991_v40  ;;  %1024 = vmatprep.subr.bf16.mxu1 %v1993_v41 }
 0x26e   :  { %1013 = vmatprep.mubr.bf16.mxu0 %v2493_v17  ;;  %1054 = vmatprep.mubr.bf16.mxu1 %v2493_v17 }
 0x270   :  { %984 = vmatpush1.bf16.msra.mxu0 %v1995_v42  ;;  %1025 = vmatpush1.bf16.msra.mxu1 %v1997_v43 }
 0x271   :  { %985 = vmatprep.subr.bf16.mxu0 %v2001_v46  ;;  %1026 = vmatprep.subr.bf16.mxu1 %v2005_v47 }
 0x274   :  { %986 = vmatpush1.bf16.msra.mxu0 %v2009_v49  ;;  %1027 = vmatpush1.bf16.msra.mxu1 %v2011_v50 }
 0x275   :  { %987 = vmatprep.subr.bf16.mxu0 %v2015_v51  ;;  %1028 = vmatprep.subr.bf16.mxu1 %v2019_v52 }
 0x278   :  { %988 = vmatpush1.bf16.msra.mxu0 %v2021_v53  ;;  %1029 = vmatpush1.bf16.msra.mxu1 %v2023_v54 }
 0x279   :  { %989 = vmatprep.subr.bf16.mxu0 %v2029_v57  ;;  %1030 = vmatprep.subr.bf16.mxu1 %v2031_v58 }
 0x27c   :  { %990 = vmatpush1.bf16.msra.mxu0 %v2037_v60  ;;  %1031 = vmatpush1.bf16.msra.mxu1 %v2039_v61 }
 0x27d   :  { %991 = vmatprep.subr.bf16.mxu0 %v2043_v62  ;;  %1032 = vmatprep.subr.bf16.mxu1 %v2045_v63 }
 0x280   :  { %992 = vmatpush1.bf16.msra.mxu0 %v2047_v1  ;;  %1033 = vmatpush1.bf16.msra.mxu1 %v2051_v2 }
 0x281   :  { %993 = vmatprep.subr.bf16.mxu0 %v2055_v5  ;;  %1034 = vmatprep.subr.bf16.mxu1 %v2057_v6 }
 0x284   :  { %994 = vmatpush1.bf16.msra.mxu0 %v2063_v8  ;;  %1035 = vmatpush1.bf16.msra.mxu1 %v2065_v9 }
 0x285   :  { %995 = vmatprep.subr.bf16.mxu0 %v2069_v10  ;;  %1036 = vmatprep.subr.bf16.mxu1 %v2071_v11 }
 0x288   :  { %996 = vmatpush1.bf16.msra.mxu0 %v2075_v12  ;;  %1037 = vmatpush1.bf16.msra.mxu1 %v2077_v13 }
 0x289   :  { %1088 = vmatprep.subr.bf16.mxu0 %v1981_v35  ;;  %1129 = vmatprep.subr.bf16.mxu1 %v1983_v36 }
 0x33e   :  { %v908_v34 = vpop.f32.mrb[24].mxu0  ;;  %v949_v7 = vpop.f32.mrb[24].mxu1 }
 0x33f   :  { %v956_v15 = vadd.f32 %v908_v34, %v2144_v55  ;;  %v958_v19 = vadd.f32 %v949_v7, %v2147_v59  ;;  %v910_v30 = vpop.f32.mrb[25].mxu0  ;;  %v951_v48 = vpop.f32.mrb[25].mxu1  ;;  %v2495_v7 = vld [vmem:[#allocation14_spill] sm:$0xff] }
 0x340   :  { %v957_v22 = vadd.f32 %v910_v30, %v2149_v4  ;;  %v959_v21 = vadd.f32 %v951_v48, %v2152_v14  ;;  %v912_v23 = vpop.f32.mrb[26].mxu0  ;;  %v953_v25 = vpop.f32.mrb[26].mxu1  ;;  %v2496_v48 = vld [vmem:[#allocation15_spill] sm:$0xff] }
 0x341   :  { %1717 = vtanh.f32 %v956_v15  ;;  %v913_v24 = vpop.f32.mrb[27].mxu0  ;;  %v954_v26 = vpop.f32.mrb[27].mxu1 }
 0x342   :  { %1719 = vtanh.f32 %v957_v22 }
 0x343   :  { %1721 = vtanh.f32 %v958_v19 }
 0x344   :  { %1723 = vtanh.f32 %v959_v21  ;;  %v2497_v21 = vld [vmem:[#allocation16_spill] sm:$0xff] }
 0x34b   :  { %v1718_v27 = vpop.eup %1717 }
 0x34c   :  { %v961_v0 = vmul.f32 0.5, %v1718_v27  ;;  %v1720_v28 = vpop.eup %1719 }
 0x34d   :  { %v964_v55 = vmul.f32 0.5, %v1720_v28  ;;  %v1722_v59 = vpop.eup %1721 }
 0x34e   :  { %v962_v31 = vadd.f32 0.5, %v961_v0  ;;  %v1724_v14 = vpop.eup %1723 }
 0x34f   :  { %v965_v33 = vadd.f32 0.5, %v964_v55  ;;  %v968_v37 = vmul.f32 0.5, %v1724_v14 }
 0x350   :  { %v971_v16 = vmul.f32 %v1722_v59, %v962_v31 }
 0x351   :  { %v970_v4 = vmul.f32 %v965_v33, %v2250_v32  ;;  %v969_v44 = vadd.f32 0.5, %v968_v37 }
 0x353   :  { %v2292_v3 = vadd.f32 %v971_v16, %v970_v4 }
 0x355   :  { %1725 = vtanh.f32 %v2292_v3 }
 0x35f   :  { %v1726_v56 = vpop.eup %1725 }
 0x360   :  { %v974_v18 = vmul.f32 %v1726_v56, %v969_v44 }
 0x362   :  { %v980_v29 = vpack.c.bf16 %v974_v18, %v974_v18 }
 0x364   :  { %1014 = vmatmul.mubr.bf16.vlgmr.msra.gmra.mrb[28].mxu0 %v980_v29  ;;  %1055 = vmatmul.mubr.bf16.vlgmr.msra.gmra.mrb[28].mxu1 %v980_v29 }
 0x365   :  { %1089 = vmatpush1.bf16.msra.mxu0 %v1985_v38  ;;  %1130 = vmatpush1.bf16.msra.mxu1 %v1987_v39 }
 0x366   :  { %1090 = vmatprep.subr.bf16.mxu0 %v1991_v40  ;;  %1131 = vmatprep.subr.bf16.mxu1 %v1993_v41 }
 0x367   :  { %1120 = vmatprep.mubr.bf16.mxu0 %v2493_v17  ;;  %1161 = vmatprep.mubr.bf16.mxu1 %v2493_v17 }
 0x369   :  { %1091 = vmatpush1.bf16.msra.mxu0 %v1995_v42  ;;  %1132 = vmatpush1.bf16.msra.mxu1 %v1997_v43 }
 0x36a   :  { %1092 = vmatprep.subr.bf16.mxu0 %v2001_v46  ;;  %1133 = vmatprep.subr.bf16.mxu1 %v2005_v47 }
 0x36d   :  { %1093 = vmatpush1.bf16.msra.mxu0 %v2009_v49  ;;  %1134 = vmatpush1.bf16.msra.mxu1 %v2011_v50 }
 0x36e   :  { %1094 = vmatprep.subr.bf16.mxu0 %v2015_v51  ;;  %1135 = vmatprep.subr.bf16.mxu1 %v2019_v52 }
 0x371   :  { %1095 = vmatpush1.bf16.msra.mxu0 %v2021_v53  ;;  %1136 = vmatpush1.bf16.msra.mxu1 %v2023_v54 }
 0x372   :  { %1096 = vmatprep.subr.bf16.mxu0 %v2029_v57  ;;  %1137 = vmatprep.subr.bf16.mxu1 %v2031_v58 }
 0x375   :  { %1097 = vmatpush1.bf16.msra.mxu0 %v2037_v60  ;;  %1138 = vmatpush1.bf16.msra.mxu1 %v2039_v61 }
 0x376   :  { %1098 = vmatprep.subr.bf16.mxu0 %v2043_v62  ;;  %1139 = vmatprep.subr.bf16.mxu1 %v2045_v63 }
 0x379   :  { %1099 = vmatpush1.bf16.msra.mxu0 %v2047_v1  ;;  %1140 = vmatpush1.bf16.msra.mxu1 %v2051_v2 }
 0x37a   :  { %1100 = vmatprep.subr.bf16.mxu0 %v2055_v5  ;;  %1141 = vmatprep.subr.bf16.mxu1 %v2057_v6 }
 0x37d   :  { %1101 = vmatpush1.bf16.msra.mxu0 %v2063_v8  ;;  %1142 = vmatpush1.bf16.msra.mxu1 %v2065_v9 }
 0x37e   :  { %1102 = vmatprep.subr.bf16.mxu0 %v2069_v10  ;;  %1143 = vmatprep.subr.bf16.mxu1 %v2071_v11 }
 0x381   :  { %1103 = vmatpush1.bf16.msra.mxu0 %v2075_v12  ;;  %1144 = vmatpush1.bf16.msra.mxu1 %v2077_v13 }
 0x382   :  { %1195 = vmatprep.subr.bf16.mxu0 %v1981_v35  ;;  %1236 = vmatprep.subr.bf16.mxu1 %v1983_v36 }
 0x437   :  { %v1015_v32 = vpop.f32.mrb[28].mxu0  ;;  %v1056_v45 = vpop.f32.mrb[28].mxu1 }
 0x438   :  { %v1063_v34 = vadd.f32 %v1015_v32, %v2494_v20  ;;  %v1065_v15 = vadd.f32 %v1056_v45, %v2495_v7  ;;  %v1017_v19 = vpop.f32.mrb[29].mxu0  ;;  %v1058_v30 = vpop.f32.mrb[29].mxu1 }
 0x439   :  { %v1064_v22 = vadd.f32 %v1017_v19, %v2496_v48  ;;  %v1066_v23 = vadd.f32 %v1058_v30, %v2497_v21  ;;  %v1019_v25 = vpop.f32.mrb[30].mxu0  ;;  %v1060_v24 = vpop.f32.mrb[30].mxu1 }
 0x43a   :  { %1727 = vtanh.f32 %v1063_v34  ;;  %v1020_v26 = vpop.f32.mrb[31].mxu0  ;;  %v1061_v27 = vpop.f32.mrb[31].mxu1  ;;  %v2501_v34 = vld [vmem:[#allocation20_spill] sm:$0xff] }
 0x43b   :  { %1729 = vtanh.f32 %v1064_v22 }
 0x43c   :  { %1731 = vtanh.f32 %v1065_v15 }
 0x43d   :  { %1733 = vtanh.f32 %v1066_v23 }
 0x444   :  { %v1728_v0 = vpop.eup %1727 }
 0x445   :  { %v1068_v28 = vmul.f32 0.5, %v1728_v0  ;;  %v1730_v31 = vpop.eup %1729 }
 0x446   :  { %v1071_v59 = vmul.f32 0.5, %v1730_v31  ;;  %v1732_v33 = vpop.eup %1731 }
 0x447   :  { %v1069_v55 = vadd.f32 0.5, %v1068_v28  ;;  %v1734_v44 = vpop.eup %1733 }
 0x448   :  { %v1072_v16 = vadd.f32 0.5, %v1071_v59  ;;  %v1075_v56 = vmul.f32 0.5, %v1734_v44  ;;  %v2388_v44 = vld [vmem:[#allocation8 + $0x2c] ss:$16 sps:$4 sm:$0xff]  }
 0x449   :  { %v1078_v4 = vmul.f32 %v1732_v33, %v1069_v55 }
 0x44a   :  { %v1077_v14 = vmul.f32 %v1072_v16, %v2292_v3  ;;  %v1076_v18 = vadd.f32 0.5, %v1075_v56  ;;  %v2500_v3 = vld [vmem:[#allocation19_spill] sm:$0xff]  ;;  %v2393_v56 = vld [vmem:[#allocation8 + $0x20] ss:$16 sps:$4 sm:$0xff]  }
 0x44c   :  { %v2334_v37 = vadd.f32 %v1078_v4, %v1077_v14  ;;  %v2379_v4 = vld [vmem:[#allocation8] ss:$16 sps:$4 sm:$0xff]   ;;  %v2382_v14 = vld [vmem:[#allocation8 + $0x8] ss:$16 sps:$4 sm:$0xff]  }
 0x44e   :  { %1735 = vtanh.f32 %v2334_v37 }
 0x458   :  { %v1736_v29 = vpop.eup %1735 }
 0x459   :  { %v1081_v32 = vmul.f32 %v1736_v29, %v1076_v18  ;;  %v2396_v18 = vld [vmem:[#allocation8 + $0x28] ss:$16 sps:$4 sm:$0xff]   ;;  %v2399_v29 = vld [vmem:[#allocation8 + $0x44] ss:$16 sps:$4 sm:$0xff]  }
 0x45b   :  { %v1087_v45 = vpack.c.bf16 %v1081_v32, %v1081_v32  ;;  %v2402_v32 = vld [vmem:[#allocation8 + $0x4c] ss:$16 sps:$4 sm:$0xff]  }
 0x45d   :  { %1121 = vmatmul.mubr.bf16.vlgmr.msra.gmra.mrb[32].mxu0 %v1087_v45  ;;  %1162 = vmatmul.mubr.bf16.vlgmr.msra.gmra.mrb[32].mxu1 %v1087_v45 }
 0x45e   :  { %1196 = vmatpush1.bf16.msra.mxu0 %v1985_v38  ;;  %1237 = vmatpush1.bf16.msra.mxu1 %v1987_v39 }
 0x45f   :  { %1197 = vmatprep.subr.bf16.mxu0 %v1991_v40  ;;  %1238 = vmatprep.subr.bf16.mxu1 %v1993_v41  ;;  %v2498_v40 = vld [vmem:[#allocation17_spill] sm:$0xff] }
 0x460   :  { %1227 = vmatprep.mubr.bf16.mxu0 %v2493_v17  ;;  %1268 = vmatprep.mubr.bf16.mxu1 %v2493_v17 }
 0x462   :  { %1198 = vmatpush1.bf16.msra.mxu0 %v1995_v42  ;;  %1239 = vmatpush1.bf16.msra.mxu1 %v1997_v43  ;;  %v2499_v42 = vld [vmem:[#allocation18_spill] sm:$0xff] }
 0x463   :  { %1199 = vmatprep.subr.bf16.mxu0 %v2001_v46  ;;  %1240 = vmatprep.subr.bf16.mxu1 %v2005_v47 }
 0x466   :  { %1200 = vmatpush1.bf16.msra.mxu0 %v2009_v49  ;;  %1241 = vmatpush1.bf16.msra.mxu1 %v2011_v50 }
 0x467   :  { %1201 = vmatprep.subr.bf16.mxu0 %v2015_v51  ;;  %1242 = vmatprep.subr.bf16.mxu1 %v2019_v52 }
 0x46a   :  { %1202 = vmatpush1.bf16.msra.mxu0 %v2021_v53  ;;  %1243 = vmatpush1.bf16.msra.mxu1 %v2023_v54 }
 0x46b   :  { %1203 = vmatprep.subr.bf16.mxu0 %v2029_v57  ;;  %1244 = vmatprep.subr.bf16.mxu1 %v2031_v58 }
 0x46e   :  { %1204 = vmatpush1.bf16.msra.mxu0 %v2037_v60  ;;  %1245 = vmatpush1.bf16.msra.mxu1 %v2039_v61 }
 0x46f   :  { %1205 = vmatprep.subr.bf16.mxu0 %v2043_v62  ;;  %1246 = vmatprep.subr.bf16.mxu1 %v2045_v63 }
 0x472   :  { %1206 = vmatpush1.bf16.msra.mxu0 %v2047_v1  ;;  %1247 = vmatpush1.bf16.msra.mxu1 %v2051_v2 }
 0x473   :  { %1207 = vmatprep.subr.bf16.mxu0 %v2055_v5  ;;  %1248 = vmatprep.subr.bf16.mxu1 %v2057_v6 }
 0x476   :  { %1208 = vmatpush1.bf16.msra.mxu0 %v2063_v8  ;;  %1249 = vmatpush1.bf16.msra.mxu1 %v2065_v9 }
 0x477   :  { %1209 = vmatprep.subr.bf16.mxu0 %v2069_v10  ;;  %1250 = vmatprep.subr.bf16.mxu1 %v2071_v11 }
 0x47a   :  { %1210 = vmatpush1.bf16.msra.mxu0 %v2075_v12  ;;  %1251 = vmatpush1.bf16.msra.mxu1 %v2077_v13 }
 0x47b   :  { %1302 = vmatprep.subr.bf16.mxu0 %v1981_v35  ;;  %1343 = vmatprep.subr.bf16.mxu1 %v1983_v36 }
 0x530   :  { %v1122_v38 = vpop.f32.mrb[32].mxu0  ;;  %v1163_v39 = vpop.f32.mrb[32].mxu1 }
 0x531   :  { %v1170_v41 = vadd.f32 %v1122_v38, %v2498_v40  ;;  %v1172_v43 = vadd.f32 %v1163_v39, %v2499_v42  ;;  %v1124_v46 = vpop.f32.mrb[33].mxu0  ;;  %v1165_v47 = vpop.f32.mrb[33].mxu1 }
 0x532   :  { %v1171_v20 = vadd.f32 %v1124_v46, %v2500_v3  ;;  %v1173_v7 = vadd.f32 %v1165_v47, %v2501_v34  ;;  %v1126_v15 = vpop.f32.mrb[34].mxu0  ;;  %v1167_v19 = vpop.f32.mrb[34].mxu1 }
 0x533   :  { %1737 = vtanh.f32 %v1170_v41  ;;  %v1127_v30 = vpop.f32.mrb[35].mxu0  ;;  %v1168_v48 = vpop.f32.mrb[35].mxu1  ;;  %v1788_v15 = vld [vmem:[#allocation8 + $0x48] ss:$16 sps:$4 sm:$0xff]   ;;  %v1789_v19 = vld [vmem:[#allocation8 + $0x64] ss:$16 sps:$4 sm:$0xff]  }
 0x534   :  { %1739 = vtanh.f32 %v1171_v20  ;;  %v1790_v30 = vld [vmem:[#allocation8 + $0x6c] ss:$16 sps:$4 sm:$0xff]   ;;  %v1791_v48 = vld [vmem:[#allocation8 + $0x60] ss:$16 sps:$4 sm:$0xff]  }
 0x535   :  { %1741 = vtanh.f32 %v1172_v43 }
 0x536   :  { %1743 = vtanh.f32 %v1173_v7  ;;  %v1787_v7 = vld [vmem:[#allocation8 + $0x40] ss:$16 sps:$4 sm:$0xff]  }
 0x53d   :  { %v1738_v35 = vpop.eup %1737 }
 0x53e   :  { %v1175_v36 = vmul.f32 0.5, %v1738_v35  ;;  %v1740_v22 = vpop.eup %1739  ;;  %v1792_v35 = vld [vmem:[#allocation8 + $0x68] ss:$16 sps:$4 sm:$0xff]  }
 0x53f   :  { %v1178_v23 = vmul.f32 0.5, %v1740_v22  ;;  %v1742_v25 = vpop.eup %1741  ;;  %v1795_v22 = vld [vmem:[#allocation8 + $0x80] ss:$16 sps:$4 sm:$0xff]  }
 0x540   :  { %v1176_v21 = vadd.f32 0.5, %v1175_v36  ;;  %v1744_v28 = vpop.eup %1743  ;;  %v1794_v36 = vld [vmem:[#allocation8 + $0x8c] ss:$16 sps:$4 sm:$0xff]  }
 0x541   :  { %v1179_v24 = vadd.f32 0.5, %v1178_v23  ;;  %v1182_v31 = vmul.f32 0.5, %v1744_v28  ;;  %v1797_v23 = vld [vmem:[#allocation8 + $0xa4] ss:$16 sps:$4 sm:$0xff]   ;;  %v1803_v28 = vld [vmem:[#allocation8 + $0xc0] ss:$16 sps:$4 sm:$0xff]  }
 0x542   :  { %v1185_v26 = vmul.f32 %v1742_v25, %v1176_v21  ;;  %v1796_v21 = vld [vmem:[#allocation8 + $0x88] ss:$16 sps:$4 sm:$0xff]   ;;  %v1798_v25 = vld [vmem:[#allocation8 + $0xac] ss:$16 sps:$4 sm:$0xff]  }
 0x543   :  { %v1184_v27 = vmul.f32 %v1179_v24, %v2334_v37  ;;  %v1183_v55 = vadd.f32 0.5, %v1182_v31  ;;  %v2385_v37 = vld [vmem:[#allocation8 + $0x24] ss:$16 sps:$4 sm:$0xff]   ;;  %v1799_v24 = vld [vmem:[#allocation8 + $0xa0] ss:$16 sps:$4 sm:$0xff]  }
 0x544   :  { %v1804_v31 = vld [vmem:[#allocation8 + $0xc8] ss:$16 sps:$4 sm:$0xff]  }
 0x545   :  { %v2376_v0 = vadd.f32 %v1185_v26, %v1184_v27  ;;  %v1800_v26 = vld [vmem:[#allocation8 + $0xa8] ss:$16 sps:$4 sm:$0xff]   ;;  %v1801_v27 = vld [vmem:[#allocation8 + $0xc4] ss:$16 sps:$4 sm:$0xff]  }
 0x547   :  { %1745 = vtanh.f32 %v2376_v0 }
 0x551   :  { %v1746_v59 = vpop.eup %1745 }
 0x552   :  { %v1188_v33 = vmul.f32 %v1746_v59, %v1183_v55  ;;  %v1805_v55 = vld [vmem:[#allocation8 + $0xe4] ss:$16 sps:$4 sm:$0xff]   ;;  %v1806_v59 = vld [vmem:[#allocation8 + $0xec] ss:$16 sps:$4 sm:$0xff]  }
 0x554   :  { %v1194_v16 = vpack.c.bf16 %v1188_v33, %v1188_v33  ;;  %v1807_v33 = vld [vmem:[#allocation8 + $0xe0] ss:$16 sps:$4 sm:$0xff]  }
 0x556   :  { %1228 = vmatmul.mubr.bf16.vlgmr.msra.gmra.mrb[36].mxu0 %v1194_v16  ;;  %1269 = vmatmul.mubr.bf16.vlgmr.msra.gmra.mrb[36].mxu1 %v1194_v16  ;;  %v1808_v16 = vld [vmem:[#allocation8 + $0xe8] ss:$16 sps:$4 sm:$0xff]  }
 0x557   :  { %1303 = vmatpush1.bf16.msra.mxu0 %v2379_v4  ;;  %1344 = vmatpush1.bf16.msra.mxu1 %v2382_v14 }
 0x558   :  { %1304 = vmatprep.subr.bf16.mxu0 %v2385_v37  ;;  %1345 = vmatprep.subr.bf16.mxu1 %v2388_v44 }
 0x559   :  { %1334 = vmatprep.mubr.bf16.mxu0 %v2493_v17  ;;  %1375 = vmatprep.mubr.bf16.mxu1 %v2493_v17 }
 0x55b   :  { %1305 = vmatpush1.bf16.msra.mxu0 %v2393_v56  ;;  %1346 = vmatpush1.bf16.msra.mxu1 %v2396_v18 }
 0x55c   :  { %1306 = vmatprep.subr.bf16.mxu0 %v2399_v29  ;;  %1347 = vmatprep.subr.bf16.mxu1 %v2402_v32 }
 0x55f   :  { %1307 = vmatpush1.bf16.msra.mxu0 %v2009_v49  ;;  %1348 = vmatpush1.bf16.msra.mxu1 %v2011_v50  ;;  %v1785_v49 = vld [vmem:[#allocation8 + $0x4] ss:$16 sps:$4 sm:$0xff]   ;;  %v1786_v50 = vld [vmem:[#allocation8 + $0xc] ss:$16 sps:$4 sm:$0xff]  }
 0x560   :  { %1308 = vmatprep.subr.bf16.mxu0 %v2015_v51  ;;  %1349 = vmatprep.subr.bf16.mxu1 %v2019_v52 }
 0x563   :  { %1309 = vmatpush1.bf16.msra.mxu0 %v2021_v53  ;;  %1350 = vmatpush1.bf16.msra.mxu1 %v2023_v54  ;;  %v2502_v53 = vld [vmem:[#allocation21_spill] sm:$0xff] }
 0x564   :  { %1310 = vmatprep.subr.bf16.mxu0 %v2029_v57  ;;  %1351 = vmatprep.subr.bf16.mxu1 %v2031_v58  ;;  %v2503_v57 = vld [vmem:[#allocation22_spill] sm:$0xff] }
 0x567   :  { %1311 = vmatpush1.bf16.msra.mxu0 %v2037_v60  ;;  %1352 = vmatpush1.bf16.msra.mxu1 %v2039_v61 }
 0x568   :  { %1312 = vmatprep.subr.bf16.mxu0 %v2043_v62  ;;  %1353 = vmatprep.subr.bf16.mxu1 %v2045_v63  ;;  %v2504_v62 = vld [vmem:[#allocation23_spill] sm:$0xff] }
 0x56b   :  { %1313 = vmatpush1.bf16.msra.mxu0 %v2047_v1  ;;  %1354 = vmatpush1.bf16.msra.mxu1 %v2051_v2  ;;  %v2505_v1 = vld [vmem:[#allocation24_spill] sm:$0xff] }
 0x56c   :  { %1314 = vmatprep.subr.bf16.mxu0 %v2055_v5  ;;  %1355 = vmatprep.subr.bf16.mxu1 %v2057_v6 }
 0x56f   :  { %1315 = vmatpush1.bf16.msra.mxu0 %v2063_v8  ;;  %1356 = vmatpush1.bf16.msra.mxu1 %v2065_v9 }
 0x570   :  { %1316 = vmatprep.subr.bf16.mxu0 %v2069_v10  ;;  %1357 = vmatprep.subr.bf16.mxu1 %v2071_v11 }
 0x573   :  { %1317 = vmatpush1.bf16.msra.mxu0 %v2075_v12  ;;  %1358 = vmatpush1.bf16.msra.mxu1 %v2077_v13 }
 0x574   :  { %1409 = vmatprep.subr.bf16.mxu0 %v1785_v49  ;;  %1450 = vmatprep.subr.bf16.mxu1 %v1786_v50  ;;  %v2508_v49 = vld [vmem:[#allocation27_spill] sm:$0xff] }
 0x629   :  { %v1229_v51 = vpop.f32.mrb[36].mxu0  ;;  %v1270_v52 = vpop.f32.mrb[36].mxu1 }
 0x62a   :  { %v1277_v54 = vadd.f32 %v1229_v51, %v2502_v53  ;;  %v1279_v58 = vadd.f32 %v1270_v52, %v2503_v57  ;;  %v1231_v60 = vpop.f32.mrb[37].mxu0  ;;  %v1272_v61 = vpop.f32.mrb[37].mxu1  ;;  %v2509_v51 = vld [vmem:[#allocation28_spill] sm:$0xff] }
 0x62b   :  { %v1278_v63 = vadd.f32 %v1231_v60, %v2504_v62  ;;  %v1280_v2 = vadd.f32 %v1272_v61, %v2505_v1  ;;  %v1233_v5 = vpop.f32.mrb[38].mxu0  ;;  %v1274_v6 = vpop.f32.mrb[38].mxu1 }
 0x62c   :  { %1747 = vtanh.f32 %v1277_v54  ;;  %v1234_v8 = vpop.f32.mrb[39].mxu0  ;;  %v1275_v9 = vpop.f32.mrb[39].mxu1 }
 0x62d   :  { %1749 = vtanh.f32 %v1278_v63 }
 0x62e   :  { %1751 = vtanh.f32 %v1279_v58 }
 0x62f   :  { %1753 = vtanh.f32 %v1280_v2 }
 0x636   :  { %v1748_v10 = vpop.eup %1747 }
 0x637   :  { %v1282_v11 = vmul.f32 0.5, %v1748_v10  ;;  %v1750_v12 = vpop.eup %1749 }
 0x638   :  { %v1285_v45 = vmul.f32 0.5, %v1750_v12  ;;  %v1752_v38 = vpop.eup %1751 }
 0x639   :  { %v1283_v13 = vadd.f32 0.5, %v1282_v11  ;;  %v1754_v43 = vpop.eup %1753 }
 0x63a   :  { %v1286_v39 = vadd.f32 0.5, %v1285_v45  ;;  %v1289_v46 = vmul.f32 0.5, %v1754_v43 }
 0x63b   :  { %v1292_v40 = vmul.f32 %v1752_v38, %v1283_v13 }
 0x63c   :  { %v1291_v41 = vmul.f32 %v1286_v39, %v2376_v0  ;;  %v1290_v47 = vadd.f32 0.5, %v1289_v46  ;;  %v1802_v0 = vld [vmem:[#allocation8 + $0xcc] ss:$16 sps:$4 sm:$0xff]   ;;  %v2511_v46 = vld [vmem:[#allocation30_spill] sm:$0xff] }
 0x63e   :  { %v2432_v42 = vadd.f32 %v1292_v40, %v1291_v41  ;;  %v2510_v41 = vld [vmem:[#allocation29_spill] sm:$0xff] }
 0x640   :  { %1755 = vtanh.f32 %v2432_v42 }
 0x64a   :  { %v1756_v3 = vpop.eup %1755 }
 0x64b   :  { %v1295_v20 = vmul.f32 %v1756_v3, %v1290_v47 }
 0x64d   :  { %v1301_v34 = vpack.c.bf16 %v1295_v20, %v1295_v20 }
 0x64f   :  { %1335 = vmatmul.mubr.bf16.vlgmr.msra.gmra.mrb[40].mxu0 %v1301_v34  ;;  %1376 = vmatmul.mubr.bf16.vlgmr.msra.gmra.mrb[40].mxu1 %v1301_v34  ;;  %v2512_v34 = vld [vmem:[#allocation31_spill] sm:$0xff] }
 0x650   :  { %1410 = vmatpush1.bf16.msra.mxu0 %v2379_v4  ;;  %1451 = vmatpush1.bf16.msra.mxu1 %v2382_v14 }
 0x651   :  { %1411 = vmatprep.subr.bf16.mxu0 %v2385_v37  ;;  %1452 = vmatprep.subr.bf16.mxu1 %v2388_v44  ;;  %v2506_v37 = vld [vmem:[#allocation25_spill] sm:$0xff] }
 0x652   :  { %1441 = vmatprep.mubr.bf16.mxu0 %v2493_v17  ;;  %1482 = vmatprep.mubr.bf16.mxu1 %v2493_v17  ;;  %v1793_v17 = vld [vmem:[#allocation8 + $0x84] ss:$16 sps:$4 sm:$0xff]  }
 0x654   :  { %1412 = vmatpush1.bf16.msra.mxu0 %v2393_v56  ;;  %1453 = vmatpush1.bf16.msra.mxu1 %v2396_v18  ;;  %v2507_v56 = vld [vmem:[#allocation26_spill] sm:$0xff] }
 0x655   :  { %1413 = vmatprep.subr.bf16.mxu0 %v2399_v29  ;;  %1454 = vmatprep.subr.bf16.mxu1 %v2402_v32 }
 0x658   :  { %1414 = vmatpush1.bf16.msra.mxu0 %v1787_v7  ;;  %1455 = vmatpush1.bf16.msra.mxu1 %v1788_v15  ;;  %v2513_v7 = vld [vmem:[#allocation32_spill] sm:$0xff] }
 0x659   :  { %1415 = vmatprep.subr.bf16.mxu0 %v1789_v19  ;;  %1456 = vmatprep.subr.bf16.mxu1 %v1790_v30 }
 0x65c   :  { %1416 = vmatpush1.bf16.msra.mxu0 %v1791_v48  ;;  %1457 = vmatpush1.bf16.msra.mxu1 %v1792_v35 }
 0x65d   :  { %1417 = vmatprep.subr.bf16.mxu0 %v1793_v17  ;;  %1458 = vmatprep.subr.bf16.mxu1 %v1794_v36 }
 0x660   :  { %1418 = vmatpush1.bf16.msra.mxu0 %v1795_v22  ;;  %1459 = vmatpush1.bf16.msra.mxu1 %v1796_v21 }
 0x661   :  { %1419 = vmatprep.subr.bf16.mxu0 %v1797_v23  ;;  %1460 = vmatprep.subr.bf16.mxu1 %v1798_v25 }
 0x664   :  { %1420 = vmatpush1.bf16.msra.mxu0 %v1799_v24  ;;  %1461 = vmatpush1.bf16.msra.mxu1 %v1800_v26 }
 0x665   :  { %1421 = vmatprep.subr.bf16.mxu0 %v1801_v27  ;;  %1462 = vmatprep.subr.bf16.mxu1 %v1802_v0 }
 0x668   :  { %1422 = vmatpush1.bf16.msra.mxu0 %v1803_v28  ;;  %1463 = vmatpush1.bf16.msra.mxu1 %v1804_v31 }
 0x669   :  { %1423 = vmatprep.subr.bf16.mxu0 %v1805_v55  ;;  %1464 = vmatprep.subr.bf16.mxu1 %v1806_v59 }
 0x66c   :  { %1424 = vmatpush1.bf16.msra.mxu0 %v1807_v33  ;;  %1465 = vmatpush1.bf16.msra.mxu1 %v1808_v16 }
 0x722   :  { %v1336_v4 = vpop.f32.mrb[40].mxu0  ;;  %v1377_v14 = vpop.f32.mrb[40].mxu1 }
 0x723   :  { %v1384_v44 = vadd.f32 %v1336_v4, %v2506_v37  ;;  %v1386_v18 = vadd.f32 %v1377_v14, %v2507_v56  ;;  %v1338_v29 = vpop.f32.mrb[41].mxu0  ;;  %v1379_v32 = vpop.f32.mrb[41].mxu1 }
 0x724   :  { %v1385_v50 = vadd.f32 %v1338_v29, %v2508_v49  ;;  %v1387_v52 = vadd.f32 %v1379_v32, %v2509_v51  ;;  %v1340_v53 = vpop.f32.mrb[42].mxu0  ;;  %v1381_v54 = vpop.f32.mrb[42].mxu1 }
 0x725   :  { %1757 = vtanh.f32 %v1384_v44  ;;  %v1341_v57 = vpop.f32.mrb[43].mxu0  ;;  %v1382_v58 = vpop.f32.mrb[43].mxu1 }
 0x726   :  { %1759 = vtanh.f32 %v1385_v50 }
 0x727   :  { %1761 = vtanh.f32 %v1386_v18 }
 0x728   :  { %1763 = vtanh.f32 %v1387_v52 }
 0x72f   :  { %v1758_v60 = vpop.eup %1757 }
 0x730   :  { %v1389_v61 = vmul.f32 0.5, %v1758_v60  ;;  %v1760_v62 = vpop.eup %1759 }
 0x731   :  { %v1392_v1 = vmul.f32 0.5, %v1760_v62  ;;  %v1762_v2 = vpop.eup %1761 }
 0x732   :  { %v1390_v63 = vadd.f32 0.5, %v1389_v61  ;;  %v1764_v10 = vpop.eup %1763 }
 0x733   :  { %v1393_v5 = vadd.f32 0.5, %v1392_v1  ;;  %v1396_v11 = vmul.f32 0.5, %v1764_v10 }
 0x734   :  { %v1399_v6 = vmul.f32 %v1762_v2, %v1390_v63 }
 0x735   :  { %v1398_v8 = vmul.f32 %v1393_v5, %v2432_v42  ;;  %v1397_v12 = vadd.f32 0.5, %v1396_v11 }
 0x737   :  { %v1400_v9 = vadd.f32 %v1399_v6, %v1398_v8 }
 0x739   :  { %1765 = vtanh.f32 %v1400_v9 }
 0x743   :  { %v1766_v13 = vpop.eup %1765 }
 0x744   :  { %v1402_v45 = vmul.f32 %v1766_v13, %v1397_v12 }
 0x746   :  { %v1408_v38 = vpack.c.bf16 %v1402_v45, %v1402_v45 }
 0x748   :  { %1442 = vmatmul.mubr.bf16.vlgmr.msra.gmra.mrb[44].mxu0 %v1408_v38  ;;  %1483 = vmatmul.mubr.bf16.vlgmr.msra.gmra.mrb[44].mxu1 %v1408_v38 }
 0x81b   :  { %v1443_v39 = vpop.f32.mrb[44].mxu0  ;;  %v1484_v40 = vpop.f32.mrb[44].mxu1 }
 0x81c   :  { %v1491_v43 = vadd.f32 %v1443_v39, %v2510_v41  ;;  %v1493_v47 = vadd.f32 %v1484_v40, %v2511_v46  ;;  %v1445_v3 = vpop.f32.mrb[45].mxu0  ;;  %v1486_v20 = vpop.f32.mrb[45].mxu1 }
 0x81d   :  { %v1492_v42 = vadd.f32 %v1445_v3, %v2512_v34  ;;  %v1494_v15 = vadd.f32 %v1486_v20, %v2513_v7  ;;  %v1447_v19 = vpop.f32.mrb[46].mxu0  ;;  %v1488_v30 = vpop.f32.mrb[46].mxu1 }
 0x81e   :  { %1767 = vtanh.f32 %v1491_v43  ;;  %v1448_v48 = vpop.f32.mrb[47].mxu0  ;;  %v1489_v35 = vpop.f32.mrb[47].mxu1 }
 0x81f   :  { %1769 = vtanh.f32 %v1492_v42 }
 0x820   :  { %1771 = vtanh.f32 %v1493_v47 }
 0x821   :  { %1773 = vtanh.f32 %v1494_v15 }
 0x828   :  { %v1768_v17 = vpop.eup %1767 }
 0x829   :  { %v1496_v36 = vmul.f32 0.5, %v1768_v17  ;;  %v1770_v22 = vpop.eup %1769 }
 0x82a   :  { %v1499_v23 = vmul.f32 0.5, %v1770_v22  ;;  %v1772_v25 = vpop.eup %1771 }
 0x82b   :  { %v1497_v21 = vadd.f32 0.5, %v1496_v36  ;;  %v1774_v28 = vpop.eup %1773 }
 0x82c   :  { %v1500_v24 = vadd.f32 0.5, %v1499_v23  ;;  %v1503_v31 = vmul.f32 0.5, %v1774_v28 }
 0x82d   :  { %v1506_v26 = vmul.f32 %v1772_v25, %v1497_v21 }
 0x82e   :  { %v1505_v27 = vmul.f32 %v1500_v24, %v1400_v9  ;;  %v1504_v55 = vadd.f32 0.5, %v1503_v31 }
 0x830   :  { %v1507_v0 = vadd.f32 %v1506_v26, %v1505_v27 }
 0x832   :  { %1775 = vtanh.f32 %v1507_v0 }
 0x83c   :  { %v1776_v59 = vpop.eup %1775 }
 0x83d   :  { %v1509_v33 = vmul.f32 %v1776_v59, %v1504_v55 }
 0x83f   :  { %v1510_v16 = vmax.f32 %v1509_v33, 0.0 }
 0x841   :  { %1511 = vst [vmem:[#allocation9] sm:$0xff] %v1510_v16 }
 0x842   :  { %1886 = shalt.err (!%p1883_p0)
}
 0x843   :  { %s1887_s6 = scalar_lea.hbm %s2470_s4, 128 }
 0x844   :  { %p1888_p1 = scmp.ne.s32.totalorder %s2470_s4, %s1887_s6  ;;  %p1891_p2 = scmp.lt.u32.totalorder %s1887_s6, %s2470_s4 }
 0x846   :  { %p1893_p3 = pnand %p1891_p2, %p1888_p1 }
 0x848   :  { %1896 = shalt.err (!%p1893_p3)
}
 0x849   :  { %1521 = dma.vmem_to_hbm [thread:$0]  %s1519_s26, 128, %s2470_s4, [#allocation5]  }
 0x84a   :  { %1901 = dma.done.wait [#allocation5], 128  }
 0x84b   :  { %1902 = vsyncadd [#allocation5], 4294967168 }
 0x84c   :  { %1525 = vsyncpa [#allocation4], 1 }
 0x84d   :  { %1526 = vsyncpa [#allocation7], 1 }
 0x84e   :  { %1527 = vsyncpa [#allocation5], 1 }

</bundles_post_ra>
